<compile_context>
chip_gen: v5e
topology: v5e:2x2
jax: 0.10.0
libtpu: 0.0.40
codegen_flags: <defaults>
</compile_context>

<pallas_src>
import functools

import jax
import jax.numpy as jnp
from jax.experimental import pallas as pl
from jax.experimental.pallas import tpu as pltpu


# ------------------------------ tiling helpers --------------------------------
def _round_up(x, m):
    return ((x + m - 1) // m) * m


def _tpu_config():
    """Generation-aware VMEM budget / tile targets (conservative fallback)."""
    kind = ""
    try:
        kind = jax.devices()[0].device_kind.lower()
    except Exception:  # pragma: no cover - defensive
        pass
    if "v5" in kind or "v6" in kind:
        # 128 MiB physical VMEM: big tiles, generous scoped limit.
        return dict(vmem_limit=100 * 1024 * 1024, tile=2048,
                    hv_budget=48 * 1024 * 1024)
    # v7x (64 MiB physical VMEM) and unknown chips: stay conservative.
    return dict(vmem_limit=48 * 1024 * 1024, tile=1024,
                hv_budget=16 * 1024 * 1024)


def _row_tiling(n, target):
    """Return (n_padded, row_tile).

    Small n -> one full-extent tile (always legal).  Large n -> pad to a
    multiple of 256 and use the largest 256-aligned tile <= target dividing it,
    so we never fall back to a single full-extent (n, n) adjacency slab.
    """
    if n <= target:
        return n, n
    n_pad = _round_up(n, 256)
    t = (min(target, n_pad) // 256) * 256
    while t > 256 and n_pad % t:
        t -= 256
    return n_pad, t


# -------------------- elmo_fnn + relu (bf16 activation out) -------------------
def _elmo_fnn_kernel(x_ref, w_ref, b_ref, o_ref):
    # (TM, 3072) @ (3072, 256) on the MXU, bf16 operands, f32 accumulation.
    y = jnp.dot(x_ref[...], w_ref[...], preferred_element_type=jnp.float32)
    o_ref[...] = jnp.maximum(y + b_ref[...], 0.0).astype(o_ref.dtype)


def elmo_fnn(x_bf16, w_bf16, b_f32, *, tm, vmem_limit):
    n, d_in = x_bf16.shape
    d_out = w_bf16.shape[1]
    return pl.pallas_call(
        _elmo_fnn_kernel,
        out_shape=jax.ShapeDtypeStruct((n, d_out), jnp.bfloat16),
        grid_spec=pltpu.PrefetchScalarGridSpec(
            num_scalar_prefetch=0,
            grid=(n // tm,),
            in_specs=[
                pl.BlockSpec((tm, d_in), lambda i: (i, 0)),     # x row tile
                pl.BlockSpec((d_in, d_out), lambda i: (0, 0)),  # weight resident
                pl.BlockSpec((1, d_out), lambda i: (0, 0)),     # bias
            ],
            out_specs=pl.BlockSpec((tm, d_out), lambda i: (i, 0)),
        ),
        compiler_params=pltpu.CompilerParams(
            dimension_semantics=("parallel",),
            vmem_limit_bytes=vmem_limit),
    )(x_bf16, w_bf16, b_f32)


# --------------------------- RGCN layer: pass 1 -------------------------------
# HV = h @ [V_0 | V_1 | ... | V_{B-1}]   -> (N, B*d) bf16 intermediate
def _hv_kernel(h_ref, v_ref, o_ref):
    o_ref[...] = jnp.dot(h_ref[...], v_ref[...],
                         preferred_element_type=jnp.float32).astype(o_ref.dtype)


# --------------------------- RGCN layer: pass 2 -------------------------------
# h' = relu( sum_b sum_j A_tilde_b[i, j] @ HV_b[j] + bias )
def _rgcn_agg_kernel(hv_ref, a_ref, bias_ref, o_ref, acc_ref, *,
                     tn, d, hv_resident):
    j = pl.program_id(1)
    b = pl.program_id(2)

    @pl.when((j == 0) & (b == 0))
    def _():
        acc_ref[...] = jnp.zeros_like(acc_ref)

    if hv_resident:
        # HV DMA'd once (constant index map); slice the (tn, d) basis chunk.
        col = pl.multiple_of(j * tn, tn)
        row = pl.multiple_of(b * d, d)
        hv = hv_ref[pl.ds(col, tn), pl.ds(row, d)]
    else:
        hv = hv_ref[...]

    # bf16 MXU matmul, f32 accumulation into the VMEM-resident scratch.
    acc_ref[...] += jnp.dot(a_ref[...], hv, preferred_element_type=jnp.float32)

    @pl.when((j == pl.num_programs(1) - 1) & (b == pl.num_programs(2) - 1))
    def _():
        o_ref[...] = jnp.maximum(acc_ref[...] + bias_ref[...],
                                 0.0).astype(o_ref.dtype)


def rgcn_layer(h_bf16, v_flat_bf16, a_tilde_bf16, bias_f32, *,
               tm, tn, hv_resident, vmem_limit):
    n, d_in = h_bf16.shape
    num_bases = a_tilde_bf16.shape[0]
    bd = v_flat_bf16.shape[1]
    d = bd // num_bases

    # pass 1: all basis projections in one wide matmul per row tile.
    hv = pl.pallas_call(
        _hv_kernel,
        out_shape=jax.ShapeDtypeStruct((n, bd), jnp.bfloat16),
        grid_spec=pltpu.PrefetchScalarGridSpec(
            num_scalar_prefetch=0,
            grid=(n // tm,),
            in_specs=[
                pl.BlockSpec((tm, d_in), lambda i: (i, 0)),
                pl.BlockSpec((d_in, bd), lambda i: (0, 0)),
            ],
            out_specs=pl.BlockSpec((tm, bd), lambda i: (i, 0)),
        ),
        compiler_params=pltpu.CompilerParams(
            dimension_semantics=("parallel",),
            vmem_limit_bytes=vmem_limit),
    )(h_bf16, v_flat_bf16)

    # pass 2: tiled aggregation over (row tiles, column tiles, bases).
    if hv_resident:
        hv_spec = pl.BlockSpec((n, bd), lambda i, j, b: (0, 0))   # resident
    else:
        hv_spec = pl.BlockSpec((tn, d), lambda i, j, b: (j, b))   # streamed

    kernel = functools.partial(_rgcn_agg_kernel, tn=tn, d=d,
                               hv_resident=hv_resident)
    # Note: on v6e a pipeline_mode=pl.Buffered(3) on the A_tilde BlockSpec can
    # further hide DMA jitter on the only per-step-changing stream; left at the
    # default double buffering here.
    return pl.pallas_call(
        kernel,
        out_shape=jax.ShapeDtypeStruct((n, d), jnp.bfloat16),
        grid_spec=pltpu.PrefetchScalarGridSpec(
            num_scalar_prefetch=0,
            grid=(n // tm, n // tn, num_bases),
            in_specs=[
                hv_spec,
                pl.BlockSpec((pl.Squeezed(), tm, tn),
                             lambda i, j, b: (b, i, j)),          # A_tilde tile
                pl.BlockSpec((1, d), lambda i, j, b: (0, 0)),     # bias
            ],
            out_specs=pl.BlockSpec((tm, d), lambda i, j, b: (i, 0)),
            scratch_shapes=[pltpu.VMEM((tm, d), jnp.float32)],    # f32 acc
        ),
        compiler_params=pltpu.CompilerParams(
            dimension_semantics=("parallel", "arbitrary", "arbitrary"),
            vmem_limit_bytes=vmem_limit),
    )(hv, a_tilde_bf16, bias_f32)


# ------------------------------- full forward --------------------------------
def rgcn_forward(x, adj, params, num_gcn_hidden_layers):
    cfg = _tpu_config()
    bs, seq, in_dim = x.shape
    n = bs * seq
    d_elmo = params["elmo_w"].shape[1]
    gnn_h_dim = 2 * d_elmo                      # torch.cat((h, zeros), -1)

    n_pad, tile = _row_tiling(n, cfg["tile"])
    tm = tn = tile

    # ---- inputs / parameters in MXU-friendly bf16 layouts (once per forward) -
    x_flat = x.reshape(n, in_dim).astype(jnp.bfloat16)
    if n_pad != n:
        x_flat = jnp.pad(x_flat, ((0, n_pad - n), (0, 0)))

    v_bases = params["v_bases"]                 # (B, d, d)
    num_bases = v_bases.shape[0]
    v_flat = (v_bases.transpose(1, 0, 2)
              .reshape(gnn_h_dim, num_bases * gnn_h_dim)
              .astype(jnp.bfloat16))            # [V_0 | V_1 | ...]

    # Fold w_comp into the adjacency (exact): A_tilde[b] = sum_r w_comp[r,b] A_r.
    a_tilde = jnp.einsum("rb,rij->bij", params["w_comp"].astype(jnp.float32),
                         adj.astype(jnp.float32))
    if n_pad != n:
        a_tilde = jnp.pad(a_tilde,
                          ((0, 0), (0, n_pad - n), (0, n_pad - n)))
    a_tilde = a_tilde.astype(jnp.bfloat16)

    hv_resident = (n_pad * num_bases * gnn_h_dim * 2) <= cfg["hv_budget"]
    bias = params["rgcn_b"].astype(jnp.float32)

    # ---- elmo_fnn + relu (256-wide, bf16) ------------------------------------
    h = elmo_fnn(x_flat, params["elmo_w"].astype(jnp.bfloat16),
                 params["elmo_b"].astype(jnp.float32),
                 tm=tm, vmem_limit=cfg["vmem_limit"])        # (n_pad, 256) bf16

    if num_gcn_hidden_layers == 0:
        # only materialize cat((h, zeros), -1) when no GCN layer consumes it
        h = jnp.concatenate([h, jnp.zeros_like(h)], axis=-1)
    else:
        # layer 0 exploits the zero upper half: [h, 0] @ V_b == h @ V_b[:256].
        h = rgcn_layer(h, v_flat[:d_elmo, :], a_tilde, bias,
                       tm=tm, tn=tn, hv_resident=hv_resident,
                       vmem_limit=cfg["vmem_limit"])
        for _ in range(num_gcn_hidden_layers - 1):
            h = rgcn_layer(h, v_flat, a_tilde, bias,
                           tm=tm, tn=tn, hv_resident=hv_resident,
                           vmem_limit=cfg["vmem_limit"])

    # ---- output head: mean over seq, 512 x out_dim matmul, softmax (XLA) -----
    h3 = h[:n].astype(jnp.float32).reshape(bs, seq, gnn_h_dim)
    hm = jnp.mean(h3, axis=1)
    logits = hm @ params["out_w"] + params["out_b"]
    return jax.nn.softmax(logits, axis=-1)


# ----------------------------- pure-JAX reference -----------------------------
def _reference_forward(x, adj, params, num_layers):
    bs, seq, _ = x.shape
    h = jnp.maximum(x.reshape(bs * seq, -1) @ params["elmo_w"]
                    + params["elmo_b"], 0.0)
    h = jnp.concatenate([h, jnp.zeros_like(h)], axis=-1)
    w = jnp.einsum("rb,bio->rio", params["w_comp"], params["v_bases"])
    for _ in range(num_layers):
        hw = jnp.einsum("ni,rio->rno", h, w)
        h = jnp.maximum(jnp.einsum("rmn,rno->mo", adj, hw)
                        + params["rgcn_b"], 0.0)
    hm = jnp.mean(h.reshape(bs, seq, -1), axis=1)
    logits = hm @ params["out_w"] + params["out_b"]
    return jax.nn.softmax(logits, axis=-1)


# TODO(synk): the ElmoEmbedder itself (options/weights files) is not part of the
# forward() compute path here; only elmo_fnn downstream of it is implemented.

if __name__ == "__main__":
    # ---- small deterministic config consistent with the module ----
    bs, seq = 2, 4
    gnn_in_dim = 1024 * 3          # hard-coded in the module
    elmo_out = 256
    gnn_h_dim = 2 * elmo_out       # 512, required by cat((h, zeros), -1).view(-1, gnn_h_dim)
    out_dim = 6
    num_rels = 3
    num_bases = 2
    num_gcn_hidden_layers = 2
    num_nodes = bs * seq
    num_edges = 16

    key = jax.random.PRNGKey(0)
    ks = jax.random.split(key, 12)

    # input h (ELMo features)
    x = jax.random.normal(ks[0], (bs, seq, gnn_in_dim), jnp.float32) * 0.1

    # parameters (deterministic, synthetic)
    elmo_w = jax.random.normal(ks[1], (gnn_in_dim, elmo_out), jnp.float32) * 0.02
    elmo_b = jax.random.normal(ks[2], (1, elmo_out), jnp.float32) * 0.02
    v_bases = jax.random.normal(ks[3], (num_bases, gnn_h_dim, gnn_h_dim), jnp.float32) * 0.05
    w_comp = jax.random.normal(ks[4], (num_rels, num_bases), jnp.float32)
    rgcn_b = jax.random.normal(ks[5], (1, gnn_h_dim), jnp.float32) * 0.02
    out_w = jax.random.normal(ks[6], (gnn_h_dim, out_dim), jnp.float32) * 0.05
    out_b = jax.random.normal(ks[7], (1, out_dim), jnp.float32) * 0.02

    # synthetic graph: edges (src -> dst) with relation type and edge norm
    src = jax.random.randint(ks[8], (num_edges,), 0, num_nodes)
    dst = jax.random.randint(ks[9], (num_edges,), 0, num_nodes)
    etype = jax.random.randint(ks[10], (num_edges,), 0, num_rels)
    norm = jax.random.uniform(ks[11], (num_edges,), jnp.float32, 0.1, 1.0)
    adj = jnp.zeros((num_rels, num_nodes, num_nodes), jnp.float32)
    adj = adj.at[etype, dst, src].add(norm)   # A_r[dst, src] = edge norm

    params = dict(elmo_w=elmo_w, elmo_b=elmo_b, v_bases=v_bases, w_comp=w_comp,
                  rgcn_b=rgcn_b, out_w=out_w, out_b=out_b)

    out = rgcn_forward(x, adj, params, num_gcn_hidden_layers)
    out = jax.block_until_ready(out)

    assert out.shape == (bs, out_dim)
    assert bool(jnp.all(jnp.isfinite(out)))
    # rows sum to 1 (softmax)
    assert bool(jnp.allclose(jnp.sum(out, axis=-1), 1.0, atol=1e-5))
    # match the f32 reference within bf16 activation tolerance
    ref = _reference_forward(x, adj, params, num_gcn_hidden_layers)
    assert bool(jnp.max(jnp.abs(out - ref)) < 3e-2)
    print("KERNEL_OK")
</pallas_src>

<mosaic_0001>
module attributes {stable_mosaic.version = 11 : i64} {
  func.func @_elmo_fnn_kernel(%arg0: i32, %arg1: memref<8x3072xbf16, #tpu.memory_space<vmem>>, %arg2: memref<3072x256xbf16, #tpu.memory_space<vmem>>, %arg3: memref<1x256xf32, #tpu.memory_space<vmem>>, %arg4: memref<8x256xbf16, #tpu.memory_space<vmem>>) attributes {dimension_semantics = [#tpu.dimension_semantics<parallel>], iteration_bounds = array<i64: 1>, scalar_prefetch = 0 : i64, scratch_operands = 0 : i64, tpu.core_type = #tpu.core_type<tc>, window_params = [{transform_indices = @transform_0, window_bounds = array<i64: 8, 3072>}, {pipeline_mode = #tpu.pipeline_mode<synchronous>, transform_indices = @transform_1, window_bounds = array<i64: 3072, 256>}, {pipeline_mode = #tpu.pipeline_mode<synchronous>, transform_indices = @transform_2, window_bounds = array<i64: 1, 256>}, {transform_indices = @transform_3, window_bounds = array<i64: 8, 256>}]} {
    %c0 = arith.constant 0 : index
    %c0_0 = arith.constant 0 : index
    %0 = vector.load %arg1[%c0, %c0_0] : memref<8x3072xbf16, #tpu.memory_space<vmem>>, vector<8x3072xbf16>
    %c0_1 = arith.constant 0 : index
    %c0_2 = arith.constant 0 : index
    %1 = vector.load %arg2[%c0_1, %c0_2] : memref<3072x256xbf16, #tpu.memory_space<vmem>>, vector<3072x256xbf16>
    %cst = arith.constant dense<0.000000e+00> : vector<8x256xf32>
    %2 = tpu.matmul %0, %1, %cst {dimension_numbers = #tpu.dot_dimension_numbers<[1], [0], [0], [1], [0, 0, 1, 1], [], []>} : vector<8x3072xbf16>, vector<3072x256xbf16>, vector<8x256xf32> -> vector<8x256xf32>
    %c0_3 = arith.constant 0 : index
    %c0_4 = arith.constant 0 : index
    %3 = vector.load %arg3[%c0_3, %c0_4] : memref<1x256xf32, #tpu.memory_space<vmem>>, vector<1x256xf32>
    %4 = vector.broadcast %3 : vector<1x256xf32> to vector<8x256xf32>
    %5 = arith.addf %2, %4 : vector<8x256xf32>
    %cst_5 = arith.constant 0.000000e+00 : f32
    %6 = vector.broadcast %cst_5 : f32 to vector<8x256xf32>
    %7 = arith.maximumf %5, %6 : vector<8x256xf32>
    %8 = arith.truncf %7 : vector<8x256xf32> to vector<8x256xbf16>
    %c0_6 = arith.constant 0 : index
    %c0_7 = arith.constant 0 : index
    %9 = vector.load %arg4[%c0_6, %c0_7] : memref<8x256xbf16, #tpu.memory_space<vmem>>, vector<8x256xbf16>
    tpu.vector_store %arg4[%c0_6, %c0_7], %8 {strides = array<i32>} : memref<8x256xbf16, #tpu.memory_space<vmem>>, vector<8x256xbf16>,
    return
  }
  func.func @transform_0(%arg0: i32) -> (i32, i32) {
    %c0_i32 = arith.constant 0 : i32
    %c0_i32_0 = arith.constant 0 : i32
    return %arg0, %c0_i32 : i32, i32
  }
  func.func @transform_1(%arg0: i32) -> (i32, i32) {
    %c0_i32 = arith.constant 0 : i32
    %c0_i32_0 = arith.constant 0 : i32
    %c0_i32_1 = arith.constant 0 : i32
    return %c0_i32, %c0_i32_0 : i32, i32
  }
  func.func @transform_2(%arg0: i32) -> (i32, i32) {
    %c0_i32 = arith.constant 0 : i32
    %c0_i32_0 = arith.constant 0 : i32
    %c0_i32_1 = arith.constant 0 : i32
    return %c0_i32, %c0_i32_0 : i32, i32
  }
  func.func @transform_3(%arg0: i32) -> (i32, i32) {
    %c0_i32 = arith.constant 0 : i32
    %c0_i32_0 = arith.constant 0 : i32
    return %arg0, %c0_i32 : i32, i32
  }
}

</mosaic_0001>

<bundles_post_ra>
// kernel: tpu_custom_call.1
= control target key start
LH: loop header
LB: loop body
LE: loop exit
PB: predicated region body
PF: predicated region fallthrough
CT: control target
= control target key end

     0   :  { %8 = vsyncpa [#allocation3], 0  ;;  %s5291_s0 = inlined_call_operand.hbm [shape: bf16[8,3072], index: 0, kind: input, shape index: {}]   ;;  %s5292_s1 = inlined_call_operand.hbm [shape: bf16[3072,256], index: 1, kind: input, shape index: {}]   ;;  %s5293_s2 = inlined_call_operand.hbm [shape: f32[1,256], index: 2, kind: input, shape index: {}]   ;;  %s5294_s3 = inlined_call_operand.hbm [shape: bf16[8,256], index: 3, kind: output, shape index: {}]  }
   0x1   :  { %9 = vsyncpa [#allocation6], 0  ;;  %s26_s14 = sshll.u32 %s5292_s1, 4  ;;  %s27_s14 = int_to_ptr.hbm [resolvable:$true] %s26_s14 }
   0x2   :  { %10 = vsyncpa [#allocation4], 0  ;;  %s5139_s15 = smov [#allocation5]   ;;  %s16_s19 = sshll.u32 %s5291_s0, 4  ;;  %s17_s19 = int_to_ptr.hbm [resolvable:$true] %s16_s19 }
   0x3   :  { %s28_s16 = sshll.u32 %s5139_s15, 4  ;;  %s5140_s20 = smov 128   ;;  %s29_s16 = int_to_ptr.vmem [resolvable:$true] %s28_s16 }
   0x4   :  { %s5141_s21 = smov 8   ;;  %s5142_s22 = smov [#allocation2]  }
   0x5   :  { %34 = dma.hbm_to_vmem [thread:$0]  %s27_s14, 49152, %s29_s16, [#allocation6], %s5140_s20, %s5140_s20, %s5141_s21  }
   0x6   :  { %s18_s23 = sshll.u32 %s5142_s22, 4  ;;  %s40_s26 = sshll.u32 %s5293_s2, 4  ;;  %s19_s23 = int_to_ptr.vmem [resolvable:$true] %s18_s23  ;;  %s41_s26 = int_to_ptr.hbm [resolvable:$true] %s40_s26 }
   0x7   :  { %21 = dma.hbm_to_vmem [thread:$0]  %s17_s19, 1536, %s19_s23, [#allocation3]  }
   0x8   :  { %s5143_s1 = smov [#allocation7]  }
   0x9   :  { %s42_s27 = sshll.u32 %s5143_s1, 4  ;;  %s43_s27 = int_to_ptr.vmem [resolvable:$true] %s42_s27 }
   0xa   :  { %45 = dma.hbm_to_vmem [thread:$0]  %s41_s26, 32, %s43_s27, [#allocation6]  }
   0xb   :  { %5133 = dma.done.wait [#allocation3], 1536  }
   0xc   :  { %5134 = vsyncadd [#allocation3], 4294965760 }
   0xd   :  { %5135 = dma.done.wait [#allocation6], 49184  }
   0xe   :  { %5136 = vsyncadd [#allocation6], 4294918112  ;;  %v3168_v0 = vld [vmem:[#allocation5 + $0x70] sm:$0xf]  ;;  %v4661_v1 = vld [vmem:[#allocation5 + $0x74] sm:$0xf0] }
   0xf   :  { %v3232_v2 = vld [vmem:[#allocation5 + $0xf0] sm:$0xf]  ;;  %v3169_v3 = vor.u32 %v4661_v1, %v3168_v0  ;;  %v4677_v4 = vld [vmem:[#allocation5 + $0xf4] sm:$0xf0]  ;;  %v3160_v11 = vld [vmem:[#allocation5 + $0x60] sm:$0xf] }
  0x10   :  { %v3296_v5 = vld [vmem:[#allocation5 + $0x170] sm:$0xf]  ;;  %v4693_v6 = vld [vmem:[#allocation5 + $0x174] sm:$0xf0]  ;;  %v3233_v7 = vor.u32 %v4677_v4, %v3232_v2  ;;  %v4659_v13 = vld [vmem:[#allocation5 + $0x64] sm:$0xf0] }
  0x11   :  { %v3297_v8 = vor.u32 %v4693_v6, %v3296_v5  ;;  %v3360_v9 = vld [vmem:[#allocation5 + $0x1f0] sm:$0xf]  ;;  %v4709_v10 = vld [vmem:[#allocation5 + $0x1f4] sm:$0xf0]  ;;  %2464 = vmatpush.bf16.msra.mxu0 %v3169_v3  ;;  %v3224_v14 = vld [vmem:[#allocation5 + $0xe0] sm:$0xf]  ;;  %v3161_v16 = vor.u32 %v4659_v13, %v3160_v11 }
  0x12   :  { %v3361_v12 = vor.u32 %v4709_v10, %v3360_v9  ;;  %v4675_v15 = vld [vmem:[#allocation5 + $0xe4] sm:$0xf0]  ;;  %2477 = vmatpush.bf16.msra.mxu1 %v3233_v7  ;;  %v3288_v18 = vld [vmem:[#allocation5 + $0x160] sm:$0xf]  ;;  %v3152_v23 = vld [vmem:[#allocation5 + $0x50] sm:$0xf] }
  0x13   :  { %2490 = vmatpush.bf16.msra.mxu2 %v3297_v8  ;;  %v3225_v17 = vor.u32 %v4675_v15, %v3224_v14  ;;  %v4691_v19 = vld [vmem:[#allocation5 + $0x164] sm:$0xf0]  ;;  %v3352_v20 = vld [vmem:[#allocation5 + $0x1e0] sm:$0xf]  ;;  %v4657_v24 = vld [vmem:[#allocation5 + $0x54] sm:$0xf0] }
  0x14   :  { %2503 = vmatpush.bf16.msra.mxu3 %v3361_v12  ;;  %v3289_v21 = vor.u32 %v4691_v19, %v3288_v18  ;;  %v4707_v22 = vld [vmem:[#allocation5 + $0x1e4] sm:$0xf0]  ;;  %v3216_v26 = vld [vmem:[#allocation5 + $0xd0] sm:$0xf]  ;;  %v4673_v27 = vld [vmem:[#allocation5 + $0xd4] sm:$0xf0]  ;;  %v3153_v29 = vor.u32 %v4657_v24, %v3152_v23 }
  0x15   :  { %v3353_v25 = vor.u32 %v4707_v22, %v3352_v20  ;;  %v3280_v28 = vld [vmem:[#allocation5 + $0x150] sm:$0xf]  ;;  %2465 = vmatpush.bf16.msra.mxu0 %v3161_v16  ;;  %v4689_v30 = vld [vmem:[#allocation5 + $0x154] sm:$0xf0]  ;;  %v3217_v33 = vor.u32 %v4673_v27, %v3216_v26  ;;  %v3144_v35 = vld [vmem:[#allocation5 + $0x40] sm:$0xf] }
  0x16   :  { %v3344_v31 = vld [vmem:[#allocation5 + $0x1d0] sm:$0xf]  ;;  %v4705_v32 = vld [vmem:[#allocation5 + $0x1d4] sm:$0xf0]  ;;  %2478 = vmatpush.bf16.msra.mxu1 %v3225_v17  ;;  %v3281_v34 = vor.u32 %v4689_v30, %v3280_v28  ;;  %v4655_v36 = vld [vmem:[#allocation5 + $0x44] sm:$0xf0] }
  0x17   :  { %2491 = vmatpush.bf16.msra.mxu2 %v3289_v21  ;;  %v3208_v37 = vld [vmem:[#allocation5 + $0xc0] sm:$0xf]  ;;  %v3345_v38 = vor.u32 %v4705_v32, %v3344_v31  ;;  %v4671_v39 = vld [vmem:[#allocation5 + $0xc4] sm:$0xf0]  ;;  %v3145_v44 = vor.u32 %v4655_v36, %v3144_v35  ;;  %v3136_v47 = vld [vmem:[#allocation5 + $0x30] sm:$0xf] }
  0x18   :  { %2504 = vmatpush.bf16.msra.mxu3 %v3353_v25  ;;  %v3272_v40 = vld [vmem:[#allocation5 + $0x140] sm:$0xf]  ;;  %v4687_v41 = vld [vmem:[#allocation5 + $0x144] sm:$0xf0]  ;;  %v3209_v45 = vor.u32 %v4671_v39, %v3208_v37  ;;  %v4653_v48 = vld [vmem:[#allocation5 + $0x34] sm:$0xf0] }
  0x19   :  { %v3336_v42 = vld [vmem:[#allocation5 + $0x1c0] sm:$0xf]  ;;  %v4703_v43 = vld [vmem:[#allocation5 + $0x1c4] sm:$0xf0]  ;;  %2466 = vmatpush.bf16.msra.mxu0 %v3153_v29  ;;  %v3273_v46 = vor.u32 %v4687_v41, %v3272_v40  ;;  %v3200_v49 = vld [vmem:[#allocation5 + $0xb0] sm:$0xf]  ;;  %v3137_v56 = vor.u32 %v4653_v48, %v3136_v47 }
  0x1a   :  { %2479 = vmatpush.bf16.msra.mxu1 %v3217_v33  ;;  %v3337_v50 = vor.u32 %v4703_v43, %v3336_v42  ;;  %v4669_v51 = vld [vmem:[#allocation5 + $0xb4] sm:$0xf0]  ;;  %v3264_v52 = vld [vmem:[#allocation5 + $0x130] sm:$0xf]  ;;  %v3128_v59 = vld [vmem:[#allocation5 + $0x20] sm:$0xf] }
  0x1b   :  { %2492 = vmatpush.bf16.msra.mxu2 %v3281_v34  ;;  %v4685_v53 = vld [vmem:[#allocation5 + $0x134] sm:$0xf0]  ;;  %v3328_v54 = vld [vmem:[#allocation5 + $0x1b0] sm:$0xf]  ;;  %v3201_v57 = vor.u32 %v4669_v51, %v3200_v49  ;;  %v4651_v60 = vld [vmem:[#allocation5 + $0x24] sm:$0xf0] }
  0x1c   :  { %2505 = vmatpush.bf16.msra.mxu3 %v3345_v38  ;;  %v4701_v55 = vld [vmem:[#allocation5 + $0x1b4] sm:$0xf0]  ;;  %v3265_v58 = vor.u32 %v4685_v53, %v3264_v52  ;;  %v3192_v61 = vld [vmem:[#allocation5 + $0xa0] sm:$0xf]  ;;  %v4667_v63 = vld [vmem:[#allocation5 + $0xa4] sm:$0xf0]  ;;  %v3129_v4 = vor.u32 %v4651_v60, %v3128_v59 }
  0x1d   :  { %2467 = vmatpush.bf16.msra.mxu0 %v3145_v44  ;;  %v3329_v62 = vor.u32 %v4701_v55, %v3328_v54  ;;  %v3256_v0 = vld [vmem:[#allocation5 + $0x120] sm:$0xf]  ;;  %v4683_v1 = vld [vmem:[#allocation5 + $0x124] sm:$0xf0]  ;;  %v3193_v5 = vor.u32 %v4667_v63, %v3192_v61  ;;  %v3120_v7 = vld [vmem:[#allocation5 + $0x10] sm:$0xf] }
  0x1e   :  { %2480 = vmatpush.bf16.msra.mxu1 %v3209_v45  ;;  %v3320_v2 = vld [vmem:[#allocation5 + $0x1a0] sm:$0xf]  ;;  %v4699_v3 = vld [vmem:[#allocation5 + $0x1a4] sm:$0xf0]  ;;  %v3257_v6 = vor.u32 %v4683_v1, %v3256_v0  ;;  %v4649_v8 = vld [vmem:[#allocation5 + $0x14] sm:$0xf0] }
  0x1f   :  { %2493 = vmatpush.bf16.msra.mxu2 %v3273_v46  ;;  %v3184_v9 = vld [vmem:[#allocation5 + $0x90] sm:$0xf]  ;;  %v3321_v10 = vor.u32 %v4699_v3, %v3320_v2  ;;  %v4665_v11 = vld [vmem:[#allocation5 + $0x94] sm:$0xf0]  ;;  %v3121_v16 = vor.u32 %v4649_v8, %v3120_v7  ;;  %v3112_v17 = vld [vmem:[#allocation5] sm:$0xf] }
  0x20   :  { %2506 = vmatpush.bf16.msra.mxu3 %v3337_v50  ;;  %v3248_v12 = vld [vmem:[#allocation5 + $0x110] sm:$0xf]  ;;  %v4681_v13 = vld [vmem:[#allocation5 + $0x114] sm:$0xf0]  ;;  %v4647_v18 = vld [vmem:[#allocation5 + $0x4] sm:$0xf0]  ;;  %v3185_v19 = vor.u32 %v4665_v11, %v3184_v9 }
  0x21   :  { %2468 = vmatpush.bf16.msra.mxu0 %v3137_v56  ;;  %v3312_v14 = vld [vmem:[#allocation5 + $0x190] sm:$0xf]  ;;  %v4697_v15 = vld [vmem:[#allocation5 + $0x194] sm:$0xf0]  ;;  %v3249_v20 = vor.u32 %v4681_v13, %v3248_v12  ;;  %v3176_v21 = vld [vmem:[#allocation5 + $0x80] sm:$0xf]  ;;  %v3113_v31 = vor.u32 %v4647_v18, %v3112_v17 }
  0x22   :  { %2481 = vmatpush.bf16.msra.mxu1 %v3201_v57  ;;  %v4663_v22 = vld [vmem:[#allocation5 + $0x84] sm:$0xf0]  ;;  %v3240_v23 = vld [vmem:[#allocation5 + $0x100] sm:$0xf]  ;;  %v3313_v24 = vor.u32 %v4697_v15, %v3312_v14  ;;  %v3424_v28 = vld [vmem:[#allocation5 + $0x270] sm:$0xf] }
  0x23   :  { %2494 = vmatpush.bf16.msra.mxu2 %v3265_v58  ;;  %v4679_v25 = vld [vmem:[#allocation5 + $0x104] sm:$0xf0]  ;;  %v3304_v26 = vld [vmem:[#allocation5 + $0x180] sm:$0xf]  ;;  %v4725_v29 = vld [vmem:[#allocation5 + $0x274] sm:$0xf0]  ;;  %v3177_v35 = vor.u32 %v4663_v22, %v3176_v21 }
  0x24   :  { %2507 = vmatpush.bf16.msra.mxu3 %v3329_v62  ;;  %v4695_v27 = vld [vmem:[#allocation5 + $0x184] sm:$0xf0]  ;;  %v3488_v30 = vld [vmem:[#allocation5 + $0x2f0] sm:$0xf]  ;;  %v4741_v32 = vld [vmem:[#allocation5 + $0x2f4] sm:$0xf0]  ;;  %v3241_v36 = vor.u32 %v4679_v25, %v3240_v23  ;;  %v3425_v40 = vor.u32 %v4725_v29, %v3424_v28 }
  0x25   :  { %2469 = vmatpush.bf16.msra.mxu0 %v3129_v4  ;;  %v3552_v33 = vld [vmem:[#allocation5 + $0x370] sm:$0xf]  ;;  %v4757_v34 = vld [vmem:[#allocation5 + $0x374] sm:$0xf0]  ;;  %v3305_v39 = vor.u32 %v4695_v27, %v3304_v26  ;;  %v3489_v41 = vor.u32 %v4741_v32, %v3488_v30  ;;  %v3416_v43 = vld [vmem:[#allocation5 + $0x260] sm:$0xf] }
  0x26   :  { %2482 = vmatpush.bf16.msra.mxu1 %v3193_v5  ;;  %v3616_v37 = vld [vmem:[#allocation5 + $0x3f0] sm:$0xf]  ;;  %v4773_v38 = vld [vmem:[#allocation5 + $0x3f4] sm:$0xf0]  ;;  %v3553_v42 = vor.u32 %v4757_v34, %v3552_v33  ;;  %v4723_v44 = vld [vmem:[#allocation5 + $0x264] sm:$0xf0] }
  0x27   :  { %2495 = vmatpush.bf16.msra.mxu2 %v3257_v6  ;;  %v3480_v45 = vld [vmem:[#allocation5 + $0x2e0] sm:$0xf]  ;;  %v3617_v46 = vor.u32 %v4773_v38, %v3616_v37  ;;  %v4739_v47 = vld [vmem:[#allocation5 + $0x2e4] sm:$0xf0]  ;;  %v3417_v52 = vor.u32 %v4723_v44, %v3416_v43  ;;  %v3408_v53 = vld [vmem:[#allocation5 + $0x250] sm:$0xf] }
  0x28   :  { %2508 = vmatpush.bf16.msra.mxu3 %v3321_v10  ;;  %v3544_v48 = vld [vmem:[#allocation5 + $0x360] sm:$0xf]  ;;  %v4755_v49 = vld [vmem:[#allocation5 + $0x364] sm:$0xf0]  ;;  %v3481_v54 = vor.u32 %v4739_v47, %v3480_v45  ;;  %v4721_v56 = vld [vmem:[#allocation5 + $0x254] sm:$0xf0] }
  0x29   :  { %2470 = vmatpush.bf16.msra.mxu0 %v3121_v16  ;;  %v3608_v50 = vld [vmem:[#allocation5 + $0x3e0] sm:$0xf]  ;;  %v4771_v51 = vld [vmem:[#allocation5 + $0x3e4] sm:$0xf0]  ;;  %v3545_v55 = vor.u32 %v4755_v49, %v3544_v48  ;;  %v3472_v57 = vld [vmem:[#allocation5 + $0x2d0] sm:$0xf]  ;;  %v3409_v0 = vor.u32 %v4721_v56, %v3408_v53 }
  0x2a   :  { %2483 = vmatpush.bf16.msra.mxu1 %v3185_v19  ;;  %v4737_v58 = vld [vmem:[#allocation5 + $0x2d4] sm:$0xf0]  ;;  %v3609_v59 = vor.u32 %v4771_v51, %v3608_v50  ;;  %v3536_v60 = vld [vmem:[#allocation5 + $0x350] sm:$0xf]  ;;  %v59_v2 = vld [vmem:[#allocation2 + $0x8] sm:$0xff]  ;;  %s5144_s0 = smov [#allocation8]  }
  0x2b   :  { %2496 = vmatpush.bf16.msra.mxu2 %v3249_v20  ;;  %v4753_v61 = vld [vmem:[#allocation5 + $0x354] sm:$0xf0]  ;;  %v3600_v62 = vld [vmem:[#allocation5 + $0x3d0] sm:$0xf]  ;;  %v3473_v1 = vor.u32 %v4737_v58, %v3472_v57  ;;  %v58_v3 = vld [vmem:[#allocation2] sm:$0xff]  ;;  %v474_v8 = vunpack.c.l.b16 %v59_v2  ;;  %v475_v10 = vunpack.c.h.b16 %v59_v2  ;;  %s3097_s2 = sshll.u32 %s5144_s0, 4  ;;  %s3098_s2 = int_to_ptr.vmem [resolvable:$true] %s3097_s2 }
  0x2c   :  { %2509 = vmatpush.bf16.msra.mxu3 %v3313_v24  ;;  %v4769_v63 = vld [vmem:[#allocation5 + $0x3d4] sm:$0xf0]  ;;  %v3537_v4 = vor.u32 %v4753_v61, %v3536_v60  ;;  %v3400_v5 = vld [vmem:[#allocation5 + $0x240] sm:$0xf]  ;;  %v4719_v6 = vld [vmem:[#allocation5 + $0x244] sm:$0xf0]  ;;  %v472_v9 = vunpack.c.l.b16 %v58_v3  ;;  %v473_v15 = vunpack.c.h.b16 %v58_v3 }
  0x2d   :  { %2471 = vmatpush.bf16.msra.mxu0 %v3113_v31  ;;  %v3464_v7 = vld [vmem:[#allocation5 + $0x2c0] sm:$0xf]  ;;  %v3601_v11 = vor.u32 %v4769_v63, %v3600_v62  ;;  %v4735_v12 = vld [vmem:[#allocation5 + $0x2c4] sm:$0xf0]  ;;  %v5174_v18 = vpack.c.b16 %v474_v8, %v474_v8  ;;  %v5178_v20 = vpack.c.b16 %v475_v10, %v475_v10  ;;  %v3401_v21 = vor.u32 %v4719_v6, %v3400_v5  ;;  %v3392_v25 = vld [vmem:[#allocation5 + $0x230] sm:$0xf] }
  0x2e   :  { %2484 = vmatpush.bf16.msra.mxu1 %v3177_v35  ;;  %v3528_v13 = vld [vmem:[#allocation5 + $0x340] sm:$0xf]  ;;  %v4751_v14 = vld [vmem:[#allocation5 + $0x344] sm:$0xf0]  ;;  %v5176_v19 = vpack.c.b16 %v472_v9, %v472_v9  ;;  %v5180_v22 = vpack.c.b16 %v473_v15, %v473_v15  ;;  %v3465_v23 = vor.u32 %v4735_v12, %v3464_v7  ;;  %v4717_v26 = vld [vmem:[#allocation5 + $0x234] sm:$0xf0] }
  0x2f   :  { %2497 = vmatpush.bf16.msra.mxu2 %v3241_v36  ;;  %v3592_v16 = vld [vmem:[#allocation5 + $0x3c0] sm:$0xf]  ;;  %v4767_v17 = vld [vmem:[#allocation5 + $0x3c4] sm:$0xf0]  ;;  %v3529_v24 = vor.u32 %v4751_v14, %v3528_v13  ;;  %v3456_v27 = vld [vmem:[#allocation5 + $0x2b0] sm:$0xf]  ;;  %v3393_v34 = vor.u32 %v4717_v26, %v3392_v25 }
  0x30   :  { %2510 = vmatpush.bf16.msra.mxu3 %v3305_v39  ;;  %v3593_v28 = vor.u32 %v4767_v17, %v3592_v16  ;;  %v4733_v29 = vld [vmem:[#allocation5 + $0x2b4] sm:$0xf0]  ;;  %v3520_v30 = vld [vmem:[#allocation5 + $0x330] sm:$0xf]  ;;  %2472 = vmatmul.bf16.vlgmr.msra.gmra.mxu0 %v5176_v19  ;;  %v3384_v37 = vld [vmem:[#allocation5 + $0x220] sm:$0xf] }
  0x31   :  { %2516 = vmatpush.bf16.msrb.mxu0 %v3425_v40  ;;  %v4749_v31 = vld [vmem:[#allocation5 + $0x334] sm:$0xf0]  ;;  %v3584_v32 = vld [vmem:[#allocation5 + $0x3b0] sm:$0xf]  ;;  %2485 = vmatmul.bf16.vlgmr.msra.gmra.mxu1 %v5180_v22  ;;  %v3457_v35 = vor.u32 %v4733_v29, %v3456_v27  ;;  %v4715_v38 = vld [vmem:[#allocation5 + $0x224] sm:$0xf0] }
  0x32   :  { %2529 = vmatpush.bf16.msrb.mxu1 %v3489_v41  ;;  %2498 = vmatmul.bf16.vlgmr.msra.gmra.mxu2 %v5174_v18  ;;  %v4765_v33 = vld [vmem:[#allocation5 + $0x3b4] sm:$0xf0]  ;;  %v3521_v36 = vor.u32 %v4749_v31, %v3520_v30  ;;  %v3448_v39 = vld [vmem:[#allocation5 + $0x2a0] sm:$0xf]  ;;  %v4731_v41 = vld [vmem:[#allocation5 + $0x2a4] sm:$0xf0] }
  0x33   :  { %2542 = vmatpush.bf16.msrb.mxu2 %v3553_v42  ;;  %2511 = vmatmul.bf16.vlgmr.msra.gmra.mxu3 %v5178_v20  ;;  %v3585_v40 = vor.u32 %v4765_v33, %v3584_v32  ;;  %v3512_v42 = vld [vmem:[#allocation5 + $0x320] sm:$0xf]  ;;  %v4747_v43 = vld [vmem:[#allocation5 + $0x324] sm:$0xf0]  ;;  %v3449_v47 = vor.u32 %v4731_v41, %v3448_v39  ;;  %v3376_v49 = vld [vmem:[#allocation5 + $0x210] sm:$0xf] }
  0x34   :  { %2555 = vmatpush.bf16.msrb.mxu3 %v3617_v46  ;;  %v3576_v44 = vld [vmem:[#allocation5 + $0x3a0] sm:$0xf]  ;;  %v4763_v45 = vld [vmem:[#allocation5 + $0x3a4] sm:$0xf0]  ;;  %v3385_v46 = vor.u32 %v4715_v38, %v3384_v37  ;;  %v3513_v48 = vor.u32 %v4747_v43, %v3512_v42  ;;  %v4713_v50 = vld [vmem:[#allocation5 + $0x214] sm:$0xf0] }
  0x35   :  { %2517 = vmatpush.bf16.msrb.mxu0 %v3417_v52  ;;  %v3440_v51 = vld [vmem:[#allocation5 + $0x290] sm:$0xf]  ;;  %v3577_v52 = vor.u32 %v4763_v45, %v3576_v44  ;;  %v4729_v53 = vld [vmem:[#allocation5 + $0x294] sm:$0xf0]  ;;  %v3368_v58 = vld [vmem:[#allocation5 + $0x200] sm:$0xf] }
  0x36   :  { %2530 = vmatpush.bf16.msrb.mxu1 %v3481_v54  ;;  %v3504_v54 = vld [vmem:[#allocation5 + $0x310] sm:$0xf]  ;;  %v4761_v57 = vld [vmem:[#allocation5 + $0x394] sm:$0xf0]  ;;  %v4711_v60 = vld [vmem:[#allocation5 + $0x204] sm:$0xf0]  ;;  %v3441_v63 = vor.u32 %v4729_v53, %v3440_v51 }
  0x37   :  { %2543 = vmatpush.bf16.msrb.mxu2 %v3545_v55  ;;  %v4745_v55 = vld [vmem:[#allocation5 + $0x314] sm:$0xf0]  ;;  %v3568_v56 = vld [vmem:[#allocation5 + $0x390] sm:$0xf]  ;;  %v3432_v61 = vld [vmem:[#allocation5 + $0x280] sm:$0xf] }
  0x38   :  { %2556 = vmatpush.bf16.msrb.mxu3 %v3609_v59  ;;  %v3377_v59 = vor.u32 %v4713_v50, %v3376_v49  ;;  %v4727_v62 = vld [vmem:[#allocation5 + $0x284] sm:$0xf0]  ;;  %v61_v3 = vld [vmem:[#allocation2 + $0x18] sm:$0xff]  ;;  %v3560_v5 = vld [vmem:[#allocation5 + $0x380] sm:$0xf]  ;;  %s3099_s30 = sshll.u32 %s5294_s3, 4  ;;  %s3100_s30 = int_to_ptr.hbm [resolvable:$true] %s3099_s30 }
  0x39   :  { %2518 = vmatpush.bf16.msrb.mxu0 %v3409_v0  ;;  %v3505_v0 = vor.u32 %v4745_v55, %v3504_v54  ;;  %v4743_v2 = vld [vmem:[#allocation5 + $0x304] sm:$0xf0]  ;;  %v60_v7 = vld [vmem:[#allocation2 + $0x10] sm:$0xff]  ;;  %v4789_v9 = vld [vmem:[#allocation5 + $0x474] sm:$0xf0]  ;;  %v478_v15 = vunpack.c.l.b16 %v61_v3  ;;  %v3433_v16 = vor.u32 %v4727_v62, %v3432_v61  ;;  %v479_v25 = vunpack.c.h.b16 %v61_v3 }
  0x3a   :  { %2531 = vmatpush.bf16.msrb.mxu1 %v3473_v1  ;;  %v3496_v1 = vld [vmem:[#allocation5 + $0x300] sm:$0xf]  ;;  %v4759_v6 = vld [vmem:[#allocation5 + $0x384] sm:$0xf0]  ;;  %v3680_v8 = vld [vmem:[#allocation5 + $0x470] sm:$0xf] }
  0x3b   :  { %2544 = vmatpush.bf16.msrb.mxu2 %v3537_v4  ;;  %v3569_v4 = vor.u32 %v4761_v57, %v3568_v56  ;;  %v3744_v10 = vld [vmem:[#allocation5 + $0x4f0] sm:$0xf]  ;;  %v4805_v12 = vld [vmem:[#allocation5 + $0x4f4] sm:$0xf0]  ;;  %v3497_v17 = vor.u32 %v4743_v2, %v3496_v1  ;;  %v3561_v26 = vor.u32 %v4759_v6, %v3560_v5  ;;  %v3681_v27 = vor.u32 %v4789_v9, %v3680_v8  ;;  %v3672_v31 = vld [vmem:[#allocation5 + $0x460] sm:$0xf] }
  0x3c   :  { %2557 = vmatpush.bf16.msrb.mxu3 %v3601_v11  ;;  %v3369_v11 = vor.u32 %v4711_v60, %v3368_v58  ;;  %v3808_v13 = vld [vmem:[#allocation5 + $0x570] sm:$0xf]  ;;  %v4821_v14 = vld [vmem:[#allocation5 + $0x574] sm:$0xf0]  ;;  %v3745_v29 = vor.u32 %v4805_v12, %v3744_v10  ;;  %v4787_v32 = vld [vmem:[#allocation5 + $0x464] sm:$0xf0]  ;;  %v5186_v38 = vpack.c.b16 %v478_v15, %v478_v15  ;;  %v5190_v42 = vpack.c.b16 %v479_v25, %v479_v25 }
  0x3d   :  { %2519 = vmatpush.bf16.msrb.mxu0 %v3401_v21  ;;  %v3872_v21 = vld [vmem:[#allocation5 + $0x5f0] sm:$0xf]  ;;  %v3809_v30 = vor.u32 %v4821_v14, %v3808_v13  ;;  %v3736_v33 = vld [vmem:[#allocation5 + $0x4e0] sm:$0xf]  ;;  %v4819_v37 = vld [vmem:[#allocation5 + $0x564] sm:$0xf0]  ;;  %v3673_v43 = vor.u32 %v4787_v32, %v3672_v31 }
  0x3e   :  { %2532 = vmatpush.bf16.msrb.mxu1 %v3465_v23  ;;  %v4837_v23 = vld [vmem:[#allocation5 + $0x5f4] sm:$0xf0]  ;;  %v3864_v39 = vld [vmem:[#allocation5 + $0x5e0] sm:$0xf]  ;;  %v3728_v49 = vld [vmem:[#allocation5 + $0x4d0] sm:$0xf] }
  0x3f   :  { %2545 = vmatpush.bf16.msrb.mxu2 %v3529_v24  ;;  %v476_v24 = vunpack.c.l.b16 %v60_v7  ;;  %v4801_v51 = vld [vmem:[#allocation5 + $0x4d4] sm:$0xf0]  ;;  %v3856_v54 = vld [vmem:[#allocation5 + $0x5d0] sm:$0xf]  ;;  %v4783_v60 = vld [vmem:[#allocation5 + $0x444] sm:$0xf0] }
  0x40   :  { %2558 = vmatpush.bf16.msrb.mxu3 %v3593_v28  ;;  %v477_v28 = vunpack.c.h.b16 %v60_v7  ;;  %v4817_v53 = vld [vmem:[#allocation5 + $0x554] sm:$0xf0]  ;;  %v3729_v57 = vor.u32 %v4801_v51, %v3728_v49  ;;  %v3720_v61 = vld [vmem:[#allocation5 + $0x4c0] sm:$0xf]  ;;  %v4815_v1 = vld [vmem:[#allocation5 + $0x544] sm:$0xf0] }
  0x41   :  { %2520 = vmatpush.bf16.msrb.mxu0 %v3393_v34  ;;  %v3873_v34 = vor.u32 %v4837_v23, %v3872_v21  ;;  %v5188_v41 = vpack.c.b16 %v476_v24, %v476_v24  ;;  %v4833_v55 = vld [vmem:[#allocation5 + $0x5d4] sm:$0xf0]  ;;  %v3848_v2 = vld [vmem:[#allocation5 + $0x5c0] sm:$0xf]  ;;  %v4831_v3 = vld [vmem:[#allocation5 + $0x5c4] sm:$0xf0] }
  0x42   :  { %2533 = vmatpush.bf16.msrb.mxu1 %v3457_v35  ;;  %v4803_v35 = vld [vmem:[#allocation5 + $0x4e4] sm:$0xf0]  ;;  %v5192_v44 = vpack.c.b16 %v477_v28, %v477_v28  ;;  %v3857_v62 = vor.u32 %v4833_v55, %v3856_v54  ;;  %v3648_v7 = vld [vmem:[#allocation5 + $0x430] sm:$0xf]  ;;  %v4781_v8 = vld [vmem:[#allocation5 + $0x434] sm:$0xf0]  ;;  %v3849_v10 = vor.u32 %v4831_v3, %v3848_v2 }
  0x43   :  { %2546 = vmatpush.bf16.msrb.mxu2 %v3521_v36  ;;  %v3800_v36 = vld [vmem:[#allocation5 + $0x560] sm:$0xf]  ;;  %v3737_v45 = vor.u32 %v4803_v35, %v3736_v33  ;;  %v3712_v9 = vld [vmem:[#allocation5 + $0x4b0] sm:$0xf]  ;;  %v4813_v13 = vld [vmem:[#allocation5 + $0x534] sm:$0xf0] }
  0x44   :  { %2559 = vmatpush.bf16.msrb.mxu3 %v3585_v40  ;;  %v4835_v40 = vld [vmem:[#allocation5 + $0x5e4] sm:$0xf0]  ;;  %v3776_v12 = vld [vmem:[#allocation5 + $0x530] sm:$0xf]  ;;  %v4829_v15 = vld [vmem:[#allocation5 + $0x5b4] sm:$0xf0] }
  0x45   :  { %2521 = vmatpush.bf16.msrb.mxu0 %v3385_v46  ;;  %v3801_v46 = vor.u32 %v4819_v37, %v3800_v36  ;;  %v3865_v50 = vor.u32 %v4835_v40, %v3864_v39  ;;  %v3840_v14 = vld [vmem:[#allocation5 + $0x5b0] sm:$0xf]  ;;  %v3777_v21 = vor.u32 %v4813_v13, %v3776_v12  ;;  %v3640_v23 = vld [vmem:[#allocation5 + $0x420] sm:$0xf]  ;;  %v4779_v24 = vld [vmem:[#allocation5 + $0x424] sm:$0xf0] }
  0x46   :  { %2534 = vmatpush.bf16.msrb.mxu1 %v3449_v47  ;;  %v3664_v47 = vld [vmem:[#allocation5 + $0x450] sm:$0xf]  ;;  %v3704_v25 = vld [vmem:[#allocation5 + $0x4a0] sm:$0xf]  ;;  %v4827_v31 = vld [vmem:[#allocation5 + $0x5a4] sm:$0xf0]  ;;  %v3641_v32 = vor.u32 %v4779_v24, %v3640_v23 }
  0x47   :  { %2547 = vmatpush.bf16.msrb.mxu2 %v3513_v48  ;;  %v4785_v48 = vld [vmem:[#allocation5 + $0x454] sm:$0xf0]  ;;  %v3768_v28 = vld [vmem:[#allocation5 + $0x520] sm:$0xf]  ;;  %v3632_v35 = vld [vmem:[#allocation5 + $0x410] sm:$0xf] }
  0x48   :  { %2560 = vmatpush.bf16.msrb.mxu3 %v3577_v52  ;;  %v3792_v52 = vld [vmem:[#allocation5 + $0x550] sm:$0xf]  ;;  %v3665_v56 = vor.u32 %v4785_v48, %v3664_v47  ;;  %v4777_v36 = vld [vmem:[#allocation5 + $0x414] sm:$0xf0]  ;;  %v3624_v48 = vld [vmem:[#allocation5 + $0x400] sm:$0xf] }
  0x49   :  { %2522 = vmatpush.bf16.msrb.mxu0 %v3377_v59  ;;  %v3793_v58 = vor.u32 %v4817_v53, %v3792_v52  ;;  %v3656_v59 = vld [vmem:[#allocation5 + $0x440] sm:$0xf]  ;;  %v3696_v37 = vld [vmem:[#allocation5 + $0x490] sm:$0xf]  ;;  %v4793_v40 = vld [vmem:[#allocation5 + $0x494] sm:$0xf0]  ;;  %v3633_v49 = vor.u32 %v4777_v36, %v3632_v35 }
  0x4a   :  { %2535 = vmatpush.bf16.msrb.mxu1 %v3441_v63  ;;  %v4799_v63 = vld [vmem:[#allocation5 + $0x4c4] sm:$0xf0]  ;;  %v4825_v47 = vld [vmem:[#allocation5 + $0x594] sm:$0xf0]  ;;  %v3688_v51 = vld [vmem:[#allocation5 + $0x480] sm:$0xf]  ;;  %v3697_v53 = vor.u32 %v4793_v40, %v3696_v37 }
  0x4b   :  { %2548 = vmatpush.bf16.msrb.mxu2 %v3505_v0  ;;  %v3784_v0 = vld [vmem:[#allocation5 + $0x540] sm:$0xf]  ;;  %v3721_v5 = vor.u32 %v4799_v63, %v3720_v61  ;;  %v4791_v52 = vld [vmem:[#allocation5 + $0x484] sm:$0xf0]  ;;  %v4853_v63 = vld [vmem:[#allocation5 + $0x674] sm:$0xf0] }
  0x4c   :  { %2561 = vmatpush.bf16.msrb.mxu3 %v3569_v4  ;;  %v3657_v4 = vor.u32 %v4783_v60, %v3656_v59  ;;  %v3785_v6 = vor.u32 %v4815_v1, %v3784_v0  ;;  %v3752_v55 = vld [vmem:[#allocation5 + $0x500] sm:$0xf]  ;;  %v4823_v60 = vld [vmem:[#allocation5 + $0x584] sm:$0xf0]  ;;  %v4000_v0 = vld [vmem:[#allocation5 + $0x6f0] sm:$0xf] }
  0x4d   :  { %2523 = vmatpush.bf16.msrb.mxu0 %v3369_v11  ;;  %v4797_v11 = vld [vmem:[#allocation5 + $0x4b4] sm:$0xf0]  ;;  %v3816_v59 = vld [vmem:[#allocation5 + $0x580] sm:$0xf]  ;;  %v63_v61 = vld [vmem:[#allocation2 + $0x28] sm:$0xff] }
  0x4e   :  { %2536 = vmatpush.bf16.msrb.mxu1 %v3433_v16  ;;  %v3649_v16 = vor.u32 %v4781_v8, %v3648_v7  ;;  %v4869_v2 = vld [vmem:[#allocation5 + $0x6f4] sm:$0xf0]  ;;  %v4064_v3 = vld [vmem:[#allocation5 + $0x770] sm:$0xf]  ;;  %v3817_v12 = vor.u32 %v4823_v60, %v3816_v59  ;;  %v3992_v23 = vld [vmem:[#allocation5 + $0x6e0] sm:$0xf] }
  0x4f   :  { %2549 = vmatpush.bf16.msrb.mxu2 %v3497_v17  ;;  %v3713_v17 = vor.u32 %v4797_v11, %v3712_v9  ;;  %v4128_v8 = vld [vmem:[#allocation5 + $0x7f0] sm:$0xf]  ;;  %v4901_v9 = vld [vmem:[#allocation5 + $0x7f4] sm:$0xf0]  ;;  %v4879_v59 = vld [vmem:[#allocation5 + $0x744] sm:$0xf0] }
  0x50   :  { %2562 = vmatpush.bf16.msrb.mxu3 %v3561_v26  ;;  %2524 = vmatmul.bf16.vlgmr.msrb.gmra.mxu0 %v5188_v41  ;;  %v3841_v26 = vor.u32 %v4829_v15, %v3840_v14  ;;  %v483_v14 = vunpack.c.h.b16 %v63_v61  ;;  %v4001_v15 = vor.u32 %v4869_v2, %v4000_v0  ;;  %v4129_v24 = vor.u32 %v4901_v9, %v4128_v8  ;;  %v3920_v37 = vld [vmem:[#allocation5 + $0x650] sm:$0xf]  ;;  %v4104_v60 = vld [vmem:[#allocation5 + $0x7c0] sm:$0xf]  ;;  %v4845_v2 = vld [vmem:[#allocation5 + $0x634] sm:$0xf0] }
  0x51   :  { %2568 = vmatpush.bf16.msra.mxu0 %v3681_v27  ;;  %2537 = vmatmul.bf16.vlgmr.msrb.gmra.mxu1 %v5192_v44  ;;  %v4795_v27 = vld [vmem:[#allocation5 + $0x4a4] sm:$0xf0]  ;;  %v3984_v40 = vld [vmem:[#allocation5 + $0x6d0] sm:$0xf]  ;;  %v4893_v9 = vld [vmem:[#allocation5 + $0x7b4] sm:$0xf0] }
  0x52   :  { %2581 = vmatpush.bf16.msra.mxu1 %v3745_v29  ;;  %2550 = vmatmul.bf16.vlgmr.msrb.gmra.mxu2 %v5186_v38  ;;  %v4811_v29 = vld [vmem:[#allocation5 + $0x524] sm:$0xf0]  ;;  %v3705_v33 = vor.u32 %v4795_v27, %v3704_v25  ;;  %v4056_v27 = vld [vmem:[#allocation5 + $0x760] sm:$0xf]  ;;  %v4096_v8 = vld [vmem:[#allocation5 + $0x7b0] sm:$0xf] }
  0x53   :  { %2594 = vmatpush.bf16.msra.mxu2 %v3809_v30  ;;  %2563 = vmatmul.bf16.vlgmr.msrb.gmra.mxu3 %v5190_v42  ;;  %v3832_v30 = vld [vmem:[#allocation5 + $0x5a0] sm:$0xf] }
  0x54   :  { %2607 = vmatpush.bf16.msra.mxu3 %v3873_v34  ;;  %v3769_v34 = vor.u32 %v4811_v29, %v3768_v28  ;;  %v3833_v39 = vor.u32 %v4827_v31, %v3832_v30  ;;  %v4883_v28 = vld [vmem:[#allocation5 + $0x764] sm:$0xf0]  ;;  %v4120_v31 = vld [vmem:[#allocation5 + $0x7e0] sm:$0xf] }
  0x55   :  { %2569 = vmatpush.bf16.msra.mxu0 %v3673_v43  ;;  %v3760_v43 = vld [vmem:[#allocation5 + $0x510] sm:$0xf]  ;;  %v4057_v36 = vor.u32 %v4883_v28, %v4056_v27 }
  0x56   :  { %2582 = vmatpush.bf16.msra.mxu1 %v3737_v45  ;;  %v4809_v45 = vld [vmem:[#allocation5 + $0x514] sm:$0xf0] }
  0x57   :  { %2595 = vmatpush.bf16.msra.mxu2 %v3801_v46  ;;  %v3824_v46 = vld [vmem:[#allocation5 + $0x590] sm:$0xf]  ;;  %v3761_v54 = vor.u32 %v4809_v45, %v3760_v43  ;;  %v4865_v45 = vld [vmem:[#allocation5 + $0x6d4] sm:$0xf0] }
  0x58   :  { %2608 = vmatpush.bf16.msra.mxu3 %v3865_v50  ;;  %v4775_v50 = vld [vmem:[#allocation5 + $0x404] sm:$0xf0] }
  0x59   :  { %2570 = vmatpush.bf16.msra.mxu0 %v3665_v56  ;;  %v4807_v56 = vld [vmem:[#allocation5 + $0x504] sm:$0xf0]  ;;  %v3625_v1 = vor.u32 %v4775_v50, %v3624_v48  ;;  %v4112_v48 = vld [vmem:[#allocation5 + $0x7d0] sm:$0xf] }
  0x5a   :  { %2583 = vmatpush.bf16.msra.mxu1 %v3729_v57  ;;  %v62_v57 = vld [vmem:[#allocation2 + $0x20] sm:$0xff]  ;;  %v3753_v7 = vor.u32 %v4807_v56, %v3752_v55 }
  0x5b   :  { %2596 = vmatpush.bf16.msra.mxu2 %v3793_v58  ;;  %v3825_v58 = vor.u32 %v4825_v47, %v3824_v46  ;;  %v481_v11 = vunpack.c.h.b16 %v62_v57  ;;  %v4048_v46 = vld [vmem:[#allocation5 + $0x750] sm:$0xf]  ;;  %v4881_v47 = vld [vmem:[#allocation5 + $0x754] sm:$0xf0]  ;;  %v3976_v55 = vld [vmem:[#allocation5 + $0x6c0] sm:$0xf] }
  0x5c   :  { %2609 = vmatpush.bf16.msra.mxu3 %v3857_v62  ;;  %v3936_v62 = vld [vmem:[#allocation5 + $0x670] sm:$0xf] }
  0x5d   :  { %2571 = vmatpush.bf16.msra.mxu0 %v3657_v4  ;;  %v4885_v4 = vld [vmem:[#allocation5 + $0x774] sm:$0xf0]  ;;  %v3937_v13 = vor.u32 %v4853_v63, %v3936_v62  ;;  %v5202_v30 = vpack.c.b16 %v481_v11, %v481_v11 }
  0x5e   :  { %2584 = vmatpush.bf16.msra.mxu1 %v3721_v5  ;;  %v480_v5 = vunpack.c.l.b16 %v62_v57  ;;  %v4863_v57 = vld [vmem:[#allocation5 + $0x6c4] sm:$0xf0] }
  0x5f   :  { %2597 = vmatpush.bf16.msra.mxu2 %v3785_v6  ;;  %v3689_v6 = vor.u32 %v4791_v52, %v3688_v51  ;;  %v3985_v51 = vor.u32 %v4865_v45, %v3984_v40  ;;  %v4049_v52 = vor.u32 %v4881_v47, %v4048_v46  ;;  %v3977_v63 = vor.u32 %v4863_v57, %v3976_v55  ;;  %v4873_v40 = vld [vmem:[#allocation5 + $0x714] sm:$0xf0]  ;;  %v3880_v46 = vld [vmem:[#allocation5 + $0x600] sm:$0xf]  ;;  %v64_v55 = vld [vmem:[#allocation2 + $0x30] sm:$0xff] }
  0x60   :  { %2610 = vmatpush.bf16.msra.mxu3 %v3849_v10  ;;  %v482_v10 = vunpack.c.l.b16 %v63_v61  ;;  %v5198_v25 = vpack.c.b16 %v480_v5, %v480_v5  ;;  %v4895_v61 = vld [vmem:[#allocation5 + $0x7c4] sm:$0xf0]  ;;  %v4861_v5 = vld [vmem:[#allocation5 + $0x6b4] sm:$0xf0]  ;;  %v4072_v57 = vld [vmem:[#allocation5 + $0x780] sm:$0xf] }
  0x61   :  { %2572 = vmatpush.bf16.msra.mxu0 %v3649_v16  ;;  %v4065_v16 = vor.u32 %v4885_v4, %v4064_v3  ;;  %v3968_v3 = vld [vmem:[#allocation5 + $0x6b0] sm:$0xf]  ;;  %v4105_v4 = vor.u32 %v4895_v61, %v4104_v60  ;;  %v4889_v45 = vld [vmem:[#allocation5 + $0x794] sm:$0xf0] }
  0x62   :  { %2585 = vmatpush.bf16.msra.mxu1 %v3713_v17  ;;  %v3928_v17 = vld [vmem:[#allocation5 + $0x660] sm:$0xf]  ;;  %v5200_v29 = vpack.c.b16 %v482_v10, %v482_v10  ;;  %v3969_v11 = vor.u32 %v4861_v5, %v3968_v3  ;;  %v4192_v60 = vld [vmem:[#allocation5 + $0x870] sm:$0xf]  ;;  %v4917_v61 = vld [vmem:[#allocation5 + $0x874] sm:$0xf0]  ;;  %v484_v3 = vunpack.c.l.b16 %v64_v55 }
  0x63   :  { %2598 = vmatpush.bf16.msra.mxu2 %v3777_v21  ;;  %v4851_v21 = vld [vmem:[#allocation5 + $0x664] sm:$0xf0] }
  0x64   :  { %2611 = vmatpush.bf16.msra.mxu3 %v3841_v26  ;;  %v4867_v26 = vld [vmem:[#allocation5 + $0x6e4] sm:$0xf0] }
  0x65   :  { %2573 = vmatpush.bf16.msra.mxu0 %v3641_v32  ;;  %v4899_v32 = vld [vmem:[#allocation5 + $0x7e4] sm:$0xf0]  ;;  %v3993_v35 = vor.u32 %v4867_v26, %v3992_v23 }
  0x66   :  { %2586 = vmatpush.bf16.msra.mxu1 %v3705_v33  ;;  %v5204_v33 = vpack.c.b16 %v483_v14, %v483_v14  ;;  %v4121_v43 = vor.u32 %v4899_v32, %v4120_v31  ;;  %v4843_v14 = vld [vmem:[#allocation5 + $0x624] sm:$0xf0]  ;;  %v3888_v32 = vld [vmem:[#allocation5 + $0x610] sm:$0xf] }
  0x67   :  { %2599 = vmatpush.bf16.msra.mxu2 %v3769_v34  ;;  %v3929_v34 = vor.u32 %v4851_v21, %v3928_v17  ;;  %v4859_v17 = vld [vmem:[#allocation5 + $0x6a4] sm:$0xf0]  ;;  %v4024_v21 = vld [vmem:[#allocation5 + $0x720] sm:$0xf] }
  0x68   :  { %2612 = vmatpush.bf16.msra.mxu3 %v3833_v39  ;;  %v4849_v39 = vld [vmem:[#allocation5 + $0x654] sm:$0xf0]  ;;  %v4875_v23 = vld [vmem:[#allocation5 + $0x724] sm:$0xf0] }
  0x69   :  { %2574 = vmatpush.bf16.msra.mxu0 %v3633_v49  ;;  %v4897_v49 = vld [vmem:[#allocation5 + $0x7d4] sm:$0xf0]  ;;  %v3921_v50 = vor.u32 %v4849_v39, %v3920_v37  ;;  %v4891_v26 = vld [vmem:[#allocation5 + $0x7a4] sm:$0xf0]  ;;  %v4025_v31 = vor.u32 %v4875_v23, %v4024_v21  ;;  %v4016_v39 = vld [vmem:[#allocation5 + $0x710] sm:$0xf]  ;;  %v5210_v23 = vpack.c.b16 %v484_v3, %v484_v3 }
  0x6a   :  { %2587 = vmatpush.bf16.msra.mxu1 %v3697_v53  ;;  %v3912_v53 = vld [vmem:[#allocation5 + $0x640] sm:$0xf]  ;;  %v4113_v56 = vor.u32 %v4897_v49, %v4112_v48  ;;  %v4857_v37 = vld [vmem:[#allocation5 + $0x694] sm:$0xf0]  ;;  %v4839_v48 = vld [vmem:[#allocation5 + $0x604] sm:$0xf0] }
  0x6b   :  { %2600 = vmatpush.bf16.msra.mxu2 %v3761_v54  ;;  %v4847_v54 = vld [vmem:[#allocation5 + $0x644] sm:$0xf0]  ;;  %v3944_v49 = vld [vmem:[#allocation5 + $0x680] sm:$0xf]  ;;  %v4160_v3 = vld [vmem:[#allocation5 + $0x830] sm:$0xf] }
  0x6c   :  { %2613 = vmatpush.bf16.msra.mxu3 %v3825_v58  ;;  %v4040_v58 = vld [vmem:[#allocation5 + $0x740] sm:$0xf]  ;;  %v3913_v62 = vor.u32 %v4847_v54, %v3912_v53  ;;  %v4871_v54 = vld [vmem:[#allocation5 + $0x704] sm:$0xf0] }
  0x6d   :  { %2575 = vmatpush.bf16.msra.mxu0 %v3625_v1  ;;  %v4041_v0 = vor.u32 %v4879_v59, %v4040_v58  ;;  %v3904_v1 = vld [vmem:[#allocation5 + $0x630] sm:$0xf]  ;;  %v4008_v53 = vld [vmem:[#allocation5 + $0x700] sm:$0xf]  ;;  %v4887_v58 = vld [vmem:[#allocation5 + $0x784] sm:$0xf0] }
  0x6e   :  { %2588 = vmatpush.bf16.msra.mxu1 %v3689_v6  ;;  %v4032_v6 = vld [vmem:[#allocation5 + $0x730] sm:$0xf]  ;;  %v3905_v10 = vor.u32 %v4845_v2, %v3904_v1  ;;  %v65_v59 = vld [vmem:[#allocation2 + $0x38] sm:$0xff]  ;;  %v4009_v5 = vor.u32 %v4871_v54, %v4008_v53 }
  0x6f   :  { %2601 = vmatpush.bf16.msra.mxu2 %v3753_v7  ;;  %v4877_v7 = vld [vmem:[#allocation5 + $0x734] sm:$0xf0]  ;;  %v4320_v1 = vld [vmem:[#allocation5 + $0x970] sm:$0xf] }
  0x70   :  { %2614 = vmatpush.bf16.msra.mxu3 %v3817_v12  ;;  %2576 = vmatmul.bf16.vlgmr.msra.gmra.mxu0 %v5198_v25  ;;  %v4033_v12 = vor.u32 %v4877_v7, %v4032_v6  ;;  %v4949_v2 = vld [vmem:[#allocation5 + $0x974] sm:$0xf0]  ;;  %v4384_v6 = vld [vmem:[#allocation5 + $0x9f0] sm:$0xf] }
  0x71   :  { %2620 = vmatpush.bf16.msrb.mxu0 %v3937_v13  ;;  %2589 = vmatmul.bf16.vlgmr.msra.gmra.mxu1 %v5202_v30  ;;  %v3896_v13 = vld [vmem:[#allocation5 + $0x620] sm:$0xf]  ;;  %v4965_v7 = vld [vmem:[#allocation5 + $0x9f4] sm:$0xf0] }
  0x72   :  { %2633 = vmatpush.bf16.msrb.mxu1 %v4001_v15  ;;  %2602 = vmatmul.bf16.vlgmr.msra.gmra.mxu2 %v5200_v29  ;;  %v3960_v15 = vld [vmem:[#allocation5 + $0x6a0] sm:$0xf]  ;;  %v3897_v27 = vor.u32 %v4843_v14, %v3896_v13  ;;  %v4321_v14 = vor.u32 %v4949_v2, %v4320_v1  ;;  %v4385_v21 = vor.u32 %v4965_v7, %v4384_v6  ;;  %v4925_v7 = vld [vmem:[#allocation5 + $0x8b4] sm:$0xf0] }
  0x73   :  { %2646 = vmatpush.bf16.msrb.mxu2 %v4065_v16  ;;  %2615 = vmatmul.bf16.vlgmr.msra.gmra.mxu3 %v5204_v33  ;;  %v4097_v16 = vor.u32 %v4893_v9, %v4096_v8  ;;  %v3961_v28 = vor.u32 %v4859_v17, %v3960_v15  ;;  %v486_v8 = vunpack.c.l.b16 %v65_v59  ;;  %v485_v9 = vunpack.c.h.b16 %v64_v55  ;;  %v4184_v15 = vld [vmem:[#allocation5 + $0x860] sm:$0xf] }
  0x74   :  { %2659 = vmatpush.bf16.msrb.mxu3 %v4129_v24  ;;  %v4088_v24 = vld [vmem:[#allocation5 + $0x7a0] sm:$0xf] }
  0x75   :  { %2621 = vmatpush.bf16.msrb.mxu0 %v3929_v34  ;;  %v4841_v34 = vld [vmem:[#allocation5 + $0x614] sm:$0xf0]  ;;  %v4248_v17 = vld [vmem:[#allocation5 + $0x8e0] sm:$0xf] }
  0x76   :  { %2634 = vmatpush.bf16.msrb.mxu1 %v3993_v35  ;;  %v3952_v35 = vld [vmem:[#allocation5 + $0x690] sm:$0xf]  ;;  %v3889_v47 = vor.u32 %v4841_v34, %v3888_v32  ;;  %v4376_v32 = vld [vmem:[#allocation5 + $0x9e0] sm:$0xf]  ;;  %v4963_v34 = vld [vmem:[#allocation5 + $0x9e4] sm:$0xf0] }
  0x77   :  { %2647 = vmatpush.bf16.msrb.mxu2 %v4057_v36  ;;  %v4089_v36 = vor.u32 %v4891_v26, %v4088_v24  ;;  %v4931_v24 = vld [vmem:[#allocation5 + $0x8e4] sm:$0xf0]  ;;  %v4312_v26 = vld [vmem:[#allocation5 + $0x960] sm:$0xf] }
  0x78   :  { %2660 = vmatpush.bf16.msrb.mxu3 %v4121_v43  ;;  %v4080_v43 = vld [vmem:[#allocation5 + $0x790] sm:$0xf]  ;;  %v4168_v55 = vld [vmem:[#allocation5 + $0x840] sm:$0xf] }
  0x79   :  { %2622 = vmatpush.bf16.msrb.mxu0 %v3921_v50  ;;  %v4855_v50 = vld [vmem:[#allocation5 + $0x684] sm:$0xf0] }
  0x7a   :  { %2635 = vmatpush.bf16.msrb.mxu1 %v3985_v51  ;;  %v3953_v51 = vor.u32 %v4857_v37, %v3952_v35  ;;  %v4249_v37 = vor.u32 %v4931_v24, %v4248_v17  ;;  %v4216_v17 = vld [vmem:[#allocation5 + $0x8a0] sm:$0xf]  ;;  %v4923_v24 = vld [vmem:[#allocation5 + $0x8a4] sm:$0xf0] }
  0x7b   :  { %2648 = vmatpush.bf16.msrb.mxu2 %v4049_v52  ;;  %v4017_v52 = vor.u32 %v4873_v40, %v4016_v39  ;;  %v4176_v40 = vld [vmem:[#allocation5 + $0x850] sm:$0xf] }
  0x7c   :  { %2661 = vmatpush.bf16.msrb.mxu3 %v4113_v56  ;;  %v4081_v56 = vor.u32 %v4889_v45, %v4080_v43  ;;  %v4913_v43 = vld [vmem:[#allocation5 + $0x854] sm:$0xf0]  ;;  %v4240_v45 = vld [vmem:[#allocation5 + $0x8d0] sm:$0xf] }
  0x7d   :  { %2623 = vmatpush.bf16.msrb.mxu0 %v3913_v62  ;;  %v4256_v62 = vld [vmem:[#allocation5 + $0x8f0] sm:$0xf] }
  0x7e   :  { %2636 = vmatpush.bf16.msrb.mxu1 %v3977_v63  ;;  %v3881_v63 = vor.u32 %v4839_v48, %v3880_v46  ;;  %v4377_v46 = vor.u32 %v4963_v34, %v4376_v32  ;;  %v4304_v48 = vld [vmem:[#allocation5 + $0x950] sm:$0xf]  ;;  %v4344_v32 = vld [vmem:[#allocation5 + $0x9a0] sm:$0xf]  ;;  %v4955_v34 = vld [vmem:[#allocation5 + $0x9a4] sm:$0xf0] }
  0x7f   :  { %2649 = vmatpush.bf16.msrb.mxu2 %v4041_v0  ;;  %v4933_v0 = vld [vmem:[#allocation5 + $0x8f4] sm:$0xf0] }
  0x80   :  { %2662 = vmatpush.bf16.msrb.mxu3 %v4105_v4  ;;  %v3945_v4 = vor.u32 %v4855_v50, %v3944_v49  ;;  %v4257_v13 = vor.u32 %v4933_v0, %v4256_v62  ;;  %v4945_v49 = vld [vmem:[#allocation5 + $0x954] sm:$0xf0]  ;;  %v4368_v50 = vld [vmem:[#allocation5 + $0x9d0] sm:$0xf]  ;;  %v4360_v62 = vld [vmem:[#allocation5 + $0x9c0] sm:$0xf] }
  0x81   :  { %2624 = vmatpush.bf16.msrb.mxu0 %v3905_v10  ;;  %v4073_v10 = vor.u32 %v4887_v58, %v4072_v57  ;;  %v4305_v54 = vor.u32 %v4945_v49, %v4304_v48  ;;  %v4232_v57 = vld [vmem:[#allocation5 + $0x8c0] sm:$0xf]  ;;  %v4272_v48 = vld [vmem:[#allocation5 + $0x910] sm:$0xf]  ;;  %v4937_v49 = vld [vmem:[#allocation5 + $0x914] sm:$0xf0] }
  0x82   :  { %2637 = vmatpush.bf16.msrb.mxu1 %v3969_v11  ;;  %v4193_v11 = vor.u32 %v4917_v61, %v4192_v60  ;;  %v4296_v60 = vld [vmem:[#allocation5 + $0x940] sm:$0xf]  ;;  %v4943_v61 = vld [vmem:[#allocation5 + $0x944] sm:$0xf0] }
  0x83   :  { %2650 = vmatpush.bf16.msrb.mxu2 %v4033_v12  ;;  %v487_v12 = vunpack.c.h.b16 %v65_v59  ;;  %v4927_v59 = vld [vmem:[#allocation5 + $0x8c4] sm:$0xf0]  ;;  %v4297_v2 = vor.u32 %v4943_v61, %v4296_v60  ;;  %v66_v61 = vld [vmem:[#allocation2 + $0x40] sm:$0xff] }
  0x84   :  { %2663 = vmatpush.bf16.msrb.mxu3 %v4097_v16  ;;  %v4915_v16 = vld [vmem:[#allocation5 + $0x864] sm:$0xf0]  ;;  %v4233_v1 = vor.u32 %v4927_v59, %v4232_v57  ;;  %v4264_v59 = vld [vmem:[#allocation5 + $0x900] sm:$0xf] }
  0x85   :  { %2625 = vmatpush.bf16.msrb.mxu0 %v3897_v27  ;;  %v4947_v27 = vld [vmem:[#allocation5 + $0x964] sm:$0xf0]  ;;  %v5216_v35 = vpack.c.b16 %v487_v12, %v487_v12 }
  0x86   :  { %2638 = vmatpush.bf16.msrb.mxu1 %v3961_v28  ;;  %v5212_v28 = vpack.c.b16 %v486_v8, %v486_v8  ;;  %v4313_v39 = vor.u32 %v4947_v27, %v4312_v26  ;;  %v4288_v8 = vld [vmem:[#allocation5 + $0x930] sm:$0xf]  ;;  %v4280_v26 = vld [vmem:[#allocation5 + $0x920] sm:$0xf]  ;;  %v4939_v27 = vld [vmem:[#allocation5 + $0x924] sm:$0xf0] }
  0x87   :  { %2651 = vmatpush.bf16.msrb.mxu2 %v4025_v31  ;;  %v5214_v31 = vpack.c.b16 %v485_v9, %v485_v9  ;;  %v4941_v9 = vld [vmem:[#allocation5 + $0x934] sm:$0xf0]  ;;  %v4935_v60 = vld [vmem:[#allocation5 + $0x904] sm:$0xf0] }
  0x88   :  { %2664 = vmatpush.bf16.msrb.mxu3 %v4089_v36  ;;  %v4185_v36 = vor.u32 %v4915_v16, %v4184_v15  ;;  %v4152_v15 = vld [vmem:[#allocation5 + $0x820] sm:$0xf]  ;;  %v4907_v16 = vld [vmem:[#allocation5 + $0x824] sm:$0xf0] }
  0x89   :  { %2626 = vmatpush.bf16.msrb.mxu0 %v3889_v47  ;;  %v4929_v47 = vld [vmem:[#allocation5 + $0x8d4] sm:$0xf0] }
  0x8a   :  { %2639 = vmatpush.bf16.msrb.mxu1 %v3953_v51  ;;  %v4961_v51 = vld [vmem:[#allocation5 + $0x9d4] sm:$0xf0]  ;;  %v4241_v53 = vor.u32 %v4929_v47, %v4240_v45  ;;  %v4208_v45 = vld [vmem:[#allocation5 + $0x890] sm:$0xf] }
  0x8b   :  { %2652 = vmatpush.bf16.msrb.mxu2 %v4017_v52  ;;  %v4177_v52 = vor.u32 %v4913_v43, %v4176_v40  ;;  %v4369_v58 = vor.u32 %v4961_v51, %v4368_v50  ;;  %v4144_v40 = vld [vmem:[#allocation5 + $0x810] sm:$0xf]  ;;  %v4905_v43 = vld [vmem:[#allocation5 + $0x814] sm:$0xf0] }
  0x8c   :  { %2665 = vmatpush.bf16.msrb.mxu3 %v4081_v56  ;;  %v4911_v56 = vld [vmem:[#allocation5 + $0x844] sm:$0xf0]  ;;  %v4921_v47 = vld [vmem:[#allocation5 + $0x894] sm:$0xf0]  ;;  %v4336_v50 = vld [vmem:[#allocation5 + $0x990] sm:$0xf] }
  0x8d   :  { %2627 = vmatpush.bf16.msrb.mxu0 %v3881_v63  ;;  %v4959_v63 = vld [vmem:[#allocation5 + $0x9c4] sm:$0xf0]  ;;  %v4169_v0 = vor.u32 %v4911_v56, %v4168_v55  ;;  %v4953_v51 = vld [vmem:[#allocation5 + $0x994] sm:$0xf0]  ;;  %v4200_v55 = vld [vmem:[#allocation5 + $0x880] sm:$0xf]  ;;  %v4209_v57 = vor.u32 %v4921_v47, %v4208_v45 }
  0x8e   :  { %2640 = vmatpush.bf16.msrb.mxu1 %v3945_v4  ;;  %v4909_v4 = vld [vmem:[#allocation5 + $0x834] sm:$0xf0]  ;;  %v4361_v6 = vor.u32 %v4959_v63, %v4360_v62  ;;  %v4919_v56 = vld [vmem:[#allocation5 + $0x884] sm:$0xf0]  ;;  %v4337_v62 = vor.u32 %v4953_v51, %v4336_v50  ;;  %v4328_v63 = vld [vmem:[#allocation5 + $0x980] sm:$0xf] }
  0x8f   :  { %2653 = vmatpush.bf16.msrb.mxu2 %v4009_v5  ;;  %v4224_v5 = vld [vmem:[#allocation5 + $0x8b0] sm:$0xf]  ;;  %v4161_v12 = vor.u32 %v4909_v4, %v4160_v3  ;;  %v4981_v3 = vld [vmem:[#allocation5 + $0xa74] sm:$0xf0]  ;;  %v4632_v47 = vld [vmem:[#allocation5 + $0xbe0] sm:$0xf] }
  0x90   :  { %2666 = vmatpush.bf16.msrb.mxu3 %v4073_v10  ;;  %2628 = vmatmul.bf16.vlgmr.msrb.gmra.mxu0 %v5210_v23  ;;  %v4352_v10 = vld [vmem:[#allocation5 + $0x9b0] sm:$0xf] }
  0x91   :  { %2672 = vmatpush.bf16.msra.mxu0 %v4193_v11  ;;  %2641 = vmatmul.bf16.vlgmr.msrb.gmra.mxu1 %v5214_v31  ;;  %v4957_v11 = vld [vmem:[#allocation5 + $0x9b4] sm:$0xf0]  ;;  %v4512_v4 = vld [vmem:[#allocation5 + $0xaf0] sm:$0xf] }
  0x92   :  { %2685 = vmatpush.bf16.msra.mxu1 %v4257_v13  ;;  %2654 = vmatmul.bf16.vlgmr.msrb.gmra.mxu2 %v5212_v28  ;;  %v4225_v13 = vor.u32 %v4925_v7, %v4224_v5  ;;  %v4576_v7 = vld [vmem:[#allocation5 + $0xb70] sm:$0xf] }
  0x93   :  { %2698 = vmatpush.bf16.msra.mxu2 %v4321_v14  ;;  %2667 = vmatmul.bf16.vlgmr.msrb.gmra.mxu3 %v5216_v35  ;;  %v4289_v14 = vor.u32 %v4941_v9, %v4288_v8  ;;  %v5013_v8 = vld [vmem:[#allocation5 + $0xb74] sm:$0xf0]  ;;  %v488_v9 = vunpack.c.l.b16 %v66_v61 }
  0x94   :  { %2711 = vmatpush.bf16.msra.mxu3 %v4385_v21  ;;  %v4353_v21 = vor.u32 %v4957_v11, %v4352_v10  ;;  %v4201_v10 = vor.u32 %v4919_v56, %v4200_v55  ;;  %v4265_v11 = vor.u32 %v4935_v60, %v4264_v59  ;;  %v4496_v55 = vld [vmem:[#allocation5 + $0xad0] sm:$0xf]  ;;  %v5009_v59 = vld [vmem:[#allocation5 + $0xb54] sm:$0xf0] }
  0x95   :  { %2673 = vmatpush.bf16.msra.mxu0 %v4185_v36  ;;  %v4153_v36 = vor.u32 %v4907_v16, %v4152_v15  ;;  %v489_v15 = vunpack.c.h.b16 %v66_v61  ;;  %v4624_v60 = vld [vmem:[#allocation5 + $0xbd0] sm:$0xf]  ;;  %v5025_v61 = vld [vmem:[#allocation5 + $0xbd4] sm:$0xf0] }
  0x96   :  { %2686 = vmatpush.bf16.msra.mxu1 %v4249_v37  ;;  %v4217_v37 = vor.u32 %v4923_v24, %v4216_v17 }
  0x97   :  { %2699 = vmatpush.bf16.msra.mxu2 %v4313_v39  ;;  %v4281_v39 = vor.u32 %v4939_v27, %v4280_v26  ;;  %v4577_v26 = vor.u32 %v5013_v8, %v4576_v7  ;;  %v4440_v27 = vld [vmem:[#allocation5 + $0xa60] sm:$0xf]  ;;  %v5007_v7 = vld [vmem:[#allocation5 + $0xb44] sm:$0xf0] }
  0x98   :  { %2712 = vmatpush.bf16.msra.mxu3 %v4377_v46  ;;  %v4345_v46 = vor.u32 %v4955_v34, %v4344_v32  ;;  %v4979_v32 = vld [vmem:[#allocation5 + $0xa64] sm:$0xf0]  ;;  %v4504_v34 = vld [vmem:[#allocation5 + $0xae0] sm:$0xf] }
  0x99   :  { %2674 = vmatpush.bf16.msra.mxu0 %v4177_v52  ;;  %v4136_v52 = vld [vmem:[#allocation5 + $0x800] sm:$0xf]  ;;  %v4441_v50 = vor.u32 %v4979_v32, %v4440_v27  ;;  %v4608_v27 = vld [vmem:[#allocation5 + $0xbb0] sm:$0xf]  ;;  %v5021_v32 = vld [vmem:[#allocation5 + $0xbb4] sm:$0xf0] }
  0x9a   :  { %2687 = vmatpush.bf16.msra.mxu1 %v4241_v53  ;;  %v4145_v53 = vor.u32 %v4905_v43, %v4144_v40  ;;  %v4568_v40 = vld [vmem:[#allocation5 + $0xb60] sm:$0xf]  ;;  %v5011_v43 = vld [vmem:[#allocation5 + $0xb64] sm:$0xf0] }
  0x9b   :  { %2700 = vmatpush.bf16.msra.mxu2 %v4305_v54  ;;  %v4903_v54 = vld [vmem:[#allocation5 + $0x804] sm:$0xf0]  ;;  %v4616_v8 = vld [vmem:[#allocation5 + $0xbc0] sm:$0xf] }
  0x9c   :  { %2713 = vmatpush.bf16.msra.mxu3 %v4369_v58  ;;  %v4273_v58 = vor.u32 %v4937_v49, %v4272_v48  ;;  %v4137_v5 = vor.u32 %v4903_v54, %v4136_v52  ;;  %v5027_v48 = vld [vmem:[#allocation5 + $0xbe4] sm:$0xf0]  ;;  %v4569_v52 = vor.u32 %v5011_v43, %v4568_v40  ;;  %v4977_v54 = vld [vmem:[#allocation5 + $0xa54] sm:$0xf0] }
  0x9d   :  { %2675 = vmatpush.bf16.msra.mxu0 %v4169_v0  ;;  %v4951_v0 = vld [vmem:[#allocation5 + $0x984] sm:$0xf0]  ;;  %v4633_v56 = vor.u32 %v5027_v48, %v4632_v47  ;;  %v4472_v47 = vld [vmem:[#allocation5 + $0xaa0] sm:$0xf] }
  0x9e   :  { %2688 = vmatpush.bf16.msra.mxu1 %v4233_v1  ;;  %v67_v1 = vld [vmem:[#allocation2 + $0x48] sm:$0xff]  ;;  %v4329_v16 = vor.u32 %v4951_v0, %v4328_v63 }
  0x9f   :  { %2701 = vmatpush.bf16.msra.mxu2 %v4297_v2  ;;  %v4448_v2 = vld [vmem:[#allocation5 + $0xa70] sm:$0xf]  ;;  %v4971_v43 = vld [vmem:[#allocation5 + $0xa24] sm:$0xf0] }
  0xa0   :  { %2714 = vmatpush.bf16.msra.mxu3 %v4361_v6  ;;  %v4997_v6 = vld [vmem:[#allocation5 + $0xaf4] sm:$0xf0]  ;;  %v4449_v17 = vor.u32 %v4981_v3, %v4448_v2  ;;  %v4975_v2 = vld [vmem:[#allocation5 + $0xa44] sm:$0xf0]  ;;  %v4488_v3 = vld [vmem:[#allocation5 + $0xac0] sm:$0xf] }
  0xa1   :  { %2676 = vmatpush.bf16.msra.mxu0 %v4161_v12  ;;  %v4640_v12 = vld [vmem:[#allocation5 + $0xbf0] sm:$0xf]  ;;  %v4513_v24 = vor.u32 %v4997_v6, %v4512_v4  ;;  %v4625_v4 = vor.u32 %v5025_v61, %v4624_v60  ;;  %v4552_v6 = vld [vmem:[#allocation5 + $0xb40] sm:$0xf]  ;;  %v4969_v61 = vld [vmem:[#allocation5 + $0xa14] sm:$0xf0] }
  0xa2   :  { %2689 = vmatpush.bf16.msra.mxu1 %v4225_v13  ;;  %v5029_v13 = vld [vmem:[#allocation5 + $0xbf4] sm:$0xf0]  ;;  %v4400_v60 = vld [vmem:[#allocation5 + $0xa10] sm:$0xf] }
  0xa3   :  { %2702 = vmatpush.bf16.msra.mxu2 %v4289_v14  ;;  %v490_v14 = vunpack.c.l.b16 %v67_v1 }
  0xa4   :  { %2715 = vmatpush.bf16.msra.mxu3 %v4353_v21  ;;  %v491_v21 = vunpack.c.h.b16 %v67_v1  ;;  %v4424_v1 = vld [vmem:[#allocation5 + $0xa40] sm:$0xf] }
  0xa5   :  { %2677 = vmatpush.bf16.msra.mxu0 %v4153_v36  ;;  %v4641_v36 = vor.u32 %v5029_v13, %v4640_v12  ;;  %v5224_v45 = vpack.c.b16 %v490_v14, %v490_v14  ;;  %v4553_v13 = vor.u32 %v5007_v7, %v4552_v6  ;;  %v4973_v14 = vld [vmem:[#allocation5 + $0xa34] sm:$0xf0]  ;;  %v4392_v7 = vld [vmem:[#allocation5 + $0xa00] sm:$0xf] }
  0xa6   :  { %2690 = vmatpush.bf16.msra.mxu1 %v4217_v37  ;;  %v5222_v37 = vpack.c.b16 %v488_v9, %v488_v9  ;;  %v5228_v49 = vpack.c.b16 %v491_v21, %v491_v21  ;;  %v5023_v9 = vld [vmem:[#allocation5 + $0xbc4] sm:$0xf0]  ;;  %v4544_v21 = vld [vmem:[#allocation5 + $0xb30] sm:$0xf]  ;;  %v5017_v6 = vld [vmem:[#allocation5 + $0xb94] sm:$0xf0] }
  0xa7   :  { %2703 = vmatpush.bf16.msra.mxu2 %v4281_v39  ;;  %v4995_v39 = vld [vmem:[#allocation5 + $0xae4] sm:$0xf0] }
  0xa8   :  { %2716 = vmatpush.bf16.msra.mxu3 %v4345_v46  ;;  %v5226_v46 = vpack.c.b16 %v489_v15, %v489_v15  ;;  %v4505_v51 = vor.u32 %v4995_v39, %v4504_v34  ;;  %v4480_v15 = vld [vmem:[#allocation5 + $0xab0] sm:$0xf] }
  0xa9   :  { %2678 = vmatpush.bf16.msra.mxu0 %v4145_v53  ;;  %v4432_v53 = vld [vmem:[#allocation5 + $0xa50] sm:$0xf] }
  0xaa   :  { %2691 = vmatpush.bf16.msra.mxu1 %v4209_v57  ;;  %v4993_v57 = vld [vmem:[#allocation5 + $0xad4] sm:$0xf0] }
  0xab   :  { %2704 = vmatpush.bf16.msra.mxu2 %v4273_v58  ;;  %v4560_v58 = vld [vmem:[#allocation5 + $0xb50] sm:$0xf]  ;;  %v4497_v63 = vor.u32 %v4993_v57, %v4496_v55  ;;  %v5019_v55 = vld [vmem:[#allocation5 + $0xba4] sm:$0xf0] }
  0xac   :  { %2717 = vmatpush.bf16.msra.mxu3 %v4337_v62  ;;  %v4433_v62 = vor.u32 %v4977_v54, %v4432_v53  ;;  %v4561_v0 = vor.u32 %v5009_v59, %v4560_v58  ;;  %v5003_v53 = vld [vmem:[#allocation5 + $0xb24] sm:$0xf0]  ;;  %v4600_v54 = vld [vmem:[#allocation5 + $0xba0] sm:$0xf] }
  0xad   :  { %2679 = vmatpush.bf16.msra.mxu0 %v4137_v5  ;;  %v4991_v5 = vld [vmem:[#allocation5 + $0xac4] sm:$0xf0]  ;;  %v2473_v57 = vpop.f32.mrf.mxu0 }
  0xae   :  { %2692 = vmatpush.bf16.msra.mxu1 %v4201_v10  ;;  %v4425_v10 = vor.u32 %v4975_v2, %v4424_v1  ;;  %v4489_v12 = vor.u32 %v4991_v5, %v4488_v3  ;;  %v4601_v1 = vor.u32 %v5019_v55, %v4600_v54  ;;  %v4985_v2 = vld [vmem:[#allocation5 + $0xa94] sm:$0xf0]  ;;  %v4528_v3 = vld [vmem:[#allocation5 + $0xb10] sm:$0xf] }
  0xaf   :  { %2705 = vmatpush.bf16.msra.mxu2 %v4265_v11  ;;  %v4416_v11 = vld [vmem:[#allocation5 + $0xa30] sm:$0xf] }
  0xb0   :  { %2718 = vmatpush.bf16.msra.mxu3 %v4329_v16  ;;  %2680 = vmatmul.bf16.vlgmr.msra.gmra.mxu0 %v5222_v37  ;;  %v4989_v16 = vld [vmem:[#allocation5 + $0xab4] sm:$0xf0]  ;;  %v4417_v34 = vor.u32 %v4973_v14, %v4416_v11  ;;  %v4592_v5 = vld [vmem:[#allocation5 + $0xb90] sm:$0xf]  ;;  %v4456_v11 = vld [vmem:[#allocation5 + $0xa80] sm:$0xf] }
  0xb1   :  { %2724 = vmatpush.bf16.msrb.mxu0 %v4449_v17  ;;  %2693 = vmatmul.bf16.vlgmr.msra.gmra.mxu1 %v5226_v46  ;;  %v4617_v17 = vor.u32 %v5023_v9, %v4616_v8  ;;  %v4481_v39 = vor.u32 %v4989_v16, %v4480_v15  ;;  %v4401_v9 = vor.u32 %v4969_v61, %v4400_v60  ;;  %v4520_v15 = vld [vmem:[#allocation5 + $0xb00] sm:$0xf]  ;;  %v4999_v16 = vld [vmem:[#allocation5 + $0xb04] sm:$0xf0] }
  0xb2   :  { %2737 = vmatpush.bf16.msrb.mxu1 %v4513_v24  ;;  %2706 = vmatmul.bf16.vlgmr.msra.gmra.mxu2 %v5224_v45  ;;  %v5005_v24 = vld [vmem:[#allocation5 + $0xb34] sm:$0xf0] }
  0xb3   :  { %2750 = vmatpush.bf16.msrb.mxu2 %v4577_v26  ;;  %2719 = vmatmul.bf16.vlgmr.msra.gmra.mxu3 %v5228_v49  ;;  %v454_v26 = vld [vmem:[#allocation7] sm:$0x3]  ;;  %v4545_v40 = vor.u32 %v5005_v24, %v4544_v21  ;;  %v4593_v24 = vor.u32 %v5017_v6, %v4592_v5  ;;  %v4674_v5 = vld [vmem:[#allocation5 + $0xe4] sm:$0xf] }
  0xb4   :  { %2763 = vmatpush.bf16.msrb.mxu3 %v4641_v36  ;;  %v4408_v36 = vld [vmem:[#allocation5 + $0xa20] sm:$0xf]  ;;  %v456_v48 = vperm.slane %v454_v26, 0 }
  0xb5   :  { %2725 = vmatpush.bf16.msrb.mxu0 %v4441_v50  ;;  %v4609_v50 = vor.u32 %v5021_v32, %v4608_v27  ;;  %v2499_v21 = vpop.f32.mrf.mxu2  ;;  %v4584_v26 = vld [vmem:[#allocation5 + $0xb80] sm:$0xf]  ;;  %v5015_v27 = vld [vmem:[#allocation5 + $0xb84] sm:$0xf0]  ;;  %v69_v32 = vld [vmem:[#allocation2 + $0x58] sm:$0xff]  ;;  %v2475_v54 = vpop.f32.mrf.mxu0 }
  0xb6   :  { %2738 = vmatpush.bf16.msrb.mxu1 %v4505_v51  ;;  %v4987_v51 = vld [vmem:[#allocation5 + $0xaa4] sm:$0xf0]  ;;  %v4654_v54 = vld [vmem:[#allocation5 + $0x44] sm:$0xf] }
  0xb7   :  { %2751 = vmatpush.bf16.msrb.mxu2 %v4569_v52  ;;  %v4536_v52 = vld [vmem:[#allocation5 + $0xb20] sm:$0xf]  ;;  %v4473_v58 = vor.u32 %v4987_v51, %v4472_v47  ;;  %v3298_v51 = vld [vmem:[#allocation5 + $0x178] sm:$0xf0] }
  0xb8   :  { %2764 = vmatpush.bf16.msrb.mxu3 %v4633_v56  ;;  %v4409_v56 = vor.u32 %v4971_v43, %v4408_v36  ;;  %v4537_v59 = vor.u32 %v5003_v53, %v4536_v52  ;;  %v2512_v36 = vpop.f32.mrf.mxu3  ;;  %v4676_v43 = vld [vmem:[#allocation5 + $0xf4] sm:$0xf] }
  0xb9   :  { %2726 = vmatpush.bf16.msrb.mxu0 %v4433_v62  ;;  %v4464_v62 = vld [vmem:[#allocation5 + $0xa90] sm:$0xf] }
  0xba   :  { %2739 = vmatpush.bf16.msrb.mxu1 %v4497_v63  ;;  %v2474_v63 = vadd.f32 %v2473_v57, %v456_v48  ;;  %v3234_v48 = vld [vmem:[#allocation5 + $0xf8] sm:$0xf0]  ;;  %v4708_v57 = vld [vmem:[#allocation5 + $0x1f4] sm:$0xf] }
  0xbb   :  { %2752 = vmatpush.bf16.msrb.mxu2 %v4561_v0  ;;  %v2486_v0 = vpop.f32.mrf.mxu1 }
  0xbc   :  { %2765 = vmatpush.bf16.msrb.mxu3 %v4625_v4  ;;  %v5001_v4 = vld [vmem:[#allocation5 + $0xb14] sm:$0xf0]  ;;  %v2487_v8 = vadd.f32 %v2486_v0, %v2474_v63  ;;  %v495_v0 = vunpack.c.h.b16 %v69_v32 }
  0xbd   :  { %2727 = vmatpush.bf16.msrb.mxu0 %v4425_v10  ;;  %v4967_v10 = vld [vmem:[#allocation5 + $0xa04] sm:$0xf0]  ;;  %v4529_v14 = vor.u32 %v5001_v4, %v4528_v3  ;;  %v4658_v3 = vld [vmem:[#allocation5 + $0x64] sm:$0xf]  ;;  %v3162_v4 = vld [vmem:[#allocation5 + $0x68] sm:$0xf0] }
  0xbe   :  { %2740 = vmatpush.bf16.msrb.mxu1 %v4489_v12  ;;  %v4983_v12 = vld [vmem:[#allocation5 + $0xa84] sm:$0xf0]  ;;  %v4393_v47 = vor.u32 %v4967_v10, %v4392_v7  ;;  %v3290_v10 = vld [vmem:[#allocation5 + $0x168] sm:$0xf0] }
  0xbf   :  { %2753 = vmatpush.bf16.msrb.mxu2 %v4553_v13  ;;  %v4465_v13 = vor.u32 %v4985_v2, %v4464_v62  ;;  %v4457_v55 = vor.u32 %v4983_v12, %v4456_v11  ;;  %v4585_v62 = vor.u32 %v5015_v27, %v4584_v26  ;;  %v4656_v27 = vld [vmem:[#allocation5 + $0x54] sm:$0xf] }
  0xc0   :  { %2766 = vmatpush.bf16.msrb.mxu3 %v4617_v17  ;;  %v68_v17 = vld [vmem:[#allocation2 + $0x50] sm:$0xff] }
  0xc1   :  { %2728 = vmatpush.bf16.msrb.mxu0 %v4417_v34  ;;  %v2500_v34 = vadd.f32 %v2499_v21, %v2487_v8  ;;  %v492_v52 = vunpack.c.l.b16 %v68_v17  ;;  %v493_v60 = vunpack.c.h.b16 %v68_v17  ;;  %v3226_v8 = vld [vmem:[#allocation5 + $0xe8] sm:$0xf0]  ;;  %v3165_v17 = vor.u32 %v4658_v3, %v3162_v4  ;;  %v2514_v21 = vpop.f32.mrf.mxu3  ;;  %v4652_v3 = vld [vmem:[#allocation5 + $0x34] sm:$0xf]  ;;  %v3138_v4 = vld [vmem:[#allocation5 + $0x38] sm:$0xf0] }
  0xc2   :  { %2741 = vmatpush.bf16.msrb.mxu1 %v4481_v39  ;;  %v4660_v39 = vld [vmem:[#allocation5 + $0x74] sm:$0xf] }
  0xc3   :  { %2754 = vmatpush.bf16.msrb.mxu2 %v4545_v40  ;;  %v3170_v40 = vld [vmem:[#allocation5 + $0x78] sm:$0xf0]  ;;  %v5234_v53 = vadd.f32 %v2512_v36, %v2500_v34  ;;  %v2488_v61 = vpop.f32.mrf.mxu1  ;;  %v5236_v7 = vpack.c.b16 %v492_v52, %v492_v52  ;;  %v5240_v12 = vpack.c.b16 %v493_v60, %v493_v60  ;;  %v4672_v34 = vld [vmem:[#allocation5 + $0xd4] sm:$0xf]  ;;  %v3274_v60 = vld [vmem:[#allocation5 + $0x148] sm:$0xf0] }
  0xc4   :  { %2767 = vmatpush.bf16.msrb.mxu3 %v4609_v50  ;;  %v4692_v50 = vld [vmem:[#allocation5 + $0x174] sm:$0xf]  ;;  %v3173_v63 = vor.u32 %v4660_v39, %v3170_v40  ;;  %v3218_v39 = vld [vmem:[#allocation5 + $0xd8] sm:$0xf0]  ;;  %v4702_v61 = vld [vmem:[#allocation5 + $0x1c4] sm:$0xf] }
  0xc5   :  { %2729 = vmatpush.bf16.msrb.mxu0 %v4409_v56  ;;  %v4521_v56 = vor.u32 %v4999_v16, %v4520_v15  ;;  %v3301_v2 = vor.u32 %v4692_v50, %v3298_v51  ;;  %v2501_v15 = vpop.f32.mrf.mxu2  ;;  %v5242_v16 = vpack.c.b16 %v495_v0, %v495_v0  ;;  %v4688_v40 = vld [vmem:[#allocation5 + $0x154] sm:$0xf]  ;;  %v3221_v51 = vor.u32 %v4672_v34, %v3218_v39  ;;  %v3130_v34 = vld [vmem:[#allocation5 + $0x28] sm:$0xf0] }
  0xc6   :  { %2742 = vmatpush.bf16.msrb.mxu1 %v4473_v58  ;;  %v3362_v58 = vld [vmem:[#allocation5 + $0x1f8] sm:$0xf0]  ;;  %v4700_v15 = vld [vmem:[#allocation5 + $0x1b4] sm:$0xf] }
  0xc7   :  { %2755 = vmatpush.bf16.msrb.mxu2 %v4537_v59  ;;  %v494_v59 = vunpack.c.l.b16 %v69_v32  ;;  %v3365_v6 = vor.u32 %v4708_v57, %v3362_v58  ;;  %v3154_v32 = vld [vmem:[#allocation5 + $0x58] sm:$0xf0]  ;;  %v3210_v58 = vld [vmem:[#allocation5 + $0xc8] sm:$0xf0] }
  0xc8   :  { %2768 = vmatpush.bf16.msrb.mxu3 %v4601_v1  ;;  %v3237_v1 = vor.u32 %v4676_v43, %v3234_v48  ;;  %v3282_v43 = vld [vmem:[#allocation5 + $0x158] sm:$0xf0]  ;;  %v3157_v50 = vor.u32 %v4656_v27, %v3154_v32  ;;  %v4650_v32 = vld [vmem:[#allocation5 + $0x24] sm:$0xf] }
  0xc9   :  { %2730 = vmatpush.bf16.msrb.mxu0 %v4401_v9  ;;  %v4690_v9 = vld [vmem:[#allocation5 + $0x164] sm:$0xf]  ;;  %v5238_v11 = vpack.c.b16 %v494_v59, %v494_v59  ;;  %v3346_v48 = vld [vmem:[#allocation5 + $0x1d8] sm:$0xf0]  ;;  %v3285_v52 = vor.u32 %v4688_v40, %v3282_v43  ;;  %v3194_v40 = vld [vmem:[#allocation5 + $0xa8] sm:$0xf0] }
  0xca   :  { %2743 = vmatpush.bf16.msrb.mxu1 %v4465_v13  ;;  %v4706_v13 = vld [vmem:[#allocation5 + $0x1e4] sm:$0xf]  ;;  %v3293_v26 = vor.u32 %v4690_v9, %v3290_v10  ;;  %v3202_v10 = vld [vmem:[#allocation5 + $0xb8] sm:$0xf0] }
  0xcb   :  { %2756 = vmatpush.bf16.msrb.mxu2 %v4529_v14  ;;  %v3354_v14 = vld [vmem:[#allocation5 + $0x1e8] sm:$0xf0]  ;;  %v4686_v59 = vld [vmem:[#allocation5 + $0x144] sm:$0xf] }
  0xcc   :  { %2769 = vmatpush.bf16.msrb.mxu3 %v4593_v24  ;;  %v3229_v24 = vor.u32 %v4674_v5, %v3226_v8  ;;  %v3357_v36 = vor.u32 %v4706_v13, %v3354_v14  ;;  %v4668_v5 = vld [vmem:[#allocation5 + $0xb4] sm:$0xf]  ;;  %v3266_v14 = vld [vmem:[#allocation5 + $0x138] sm:$0xf0]  ;;  %v4682_v43 = vld [vmem:[#allocation5 + $0x124] sm:$0xf] }
  0xcd   :  { %2731 = vmatpush.bf16.msrb.mxu0 %v4393_v47  ;;  %v4704_v47 = vld [vmem:[#allocation5 + $0x1d4] sm:$0xf]  ;;  %v2525_v0 = vpop.f32.mrf.mxu0 }
  0xce   :  { %2744 = vmatpush.bf16.msrb.mxu1 %v4457_v55  ;;  %v3146_v55 = vld [vmem:[#allocation5 + $0x48] sm:$0xf0]  ;;  %v3349_v57 = vor.u32 %v4704_v47, %v3346_v48  ;;  %v2538_v8 = vpop.f32.mrf.mxu1  ;;  %v4684_v13 = vld [vmem:[#allocation5 + $0x134] sm:$0xf] }
  0xcf   :  { %2757 = vmatpush.bf16.msrb.mxu2 %v4521_v56  ;;  %v4670_v56 = vld [vmem:[#allocation5 + $0xc4] sm:$0xf]  ;;  %v3269_v27 = vor.u32 %v4684_v13, %v3266_v14  ;;  %v3258_v47 = vld [vmem:[#allocation5 + $0x128] sm:$0xf0] }
  0xd0   :  { %2770 = vmatpush.bf16.msrb.mxu3 %v4585_v62  ;;  %2732 = vmatmul.bf16.vlgmr.msrb.gmra.mxu0 %v5236_v7  ;;  %v3338_v62 = vld [vmem:[#allocation5 + $0x1c8] sm:$0xf0]  ;;  %v4662_v13 = vld [vmem:[#allocation5 + $0x84] sm:$0xf] }
  0xd1   :  { %2776 = vmatpush.bf16.msra.mxu0 %v3173_v63  ;;  %2745 = vmatmul.bf16.vlgmr.msrb.gmra.mxu1 %v5240_v12  ;;  %v3149_v63 = vor.u32 %v4654_v54, %v3146_v55  ;;  %v3341_v9 = vor.u32 %v4702_v61, %v3338_v62  ;;  %v3133_v54 = vor.u32 %v4650_v32, %v3130_v34  ;;  %v4664_v61 = vld [vmem:[#allocation5 + $0x94] sm:$0xf]  ;;  %v3178_v14 = vld [vmem:[#allocation5 + $0x88] sm:$0xf0] }
  0xd2   :  { %2789 = vmatpush.bf16.msra.mxu1 %v3237_v1  ;;  %2758 = vmatmul.bf16.vlgmr.msrb.gmra.mxu2 %v5238_v11  ;;  %v3213_v1 = vor.u32 %v4670_v56, %v3210_v58  ;;  %v3261_v58 = vor.u32 %v4682_v43, %v3258_v47  ;;  %v4724_v34 = vld [vmem:[#allocation5 + $0x274] sm:$0xf]  ;;  %v3554_v47 = vld [vmem:[#allocation5 + $0x378] sm:$0xf0] }
  0xd3   :  { %2802 = vmatpush.bf16.msra.mxu2 %v3301_v2  ;;  %2771 = vmatmul.bf16.vlgmr.msrb.gmra.mxu3 %v5242_v16  ;;  %v3277_v2 = vor.u32 %v4686_v59, %v3274_v60  ;;  %v4648_v59 = vld [vmem:[#allocation5 + $0x14] sm:$0xf]  ;;  %v3122_v60 = vld [vmem:[#allocation5 + $0x18] sm:$0xf0] }
  0xd4   :  { %2815 = vmatpush.bf16.msra.mxu3 %v3365_v6  ;;  %v2526_v6 = vadd.f32 %v2525_v0, %v5234_v53  ;;  %v3186_v0 = vld [vmem:[#allocation5 + $0x98] sm:$0xf0]  ;;  %v4756_v43 = vld [vmem:[#allocation5 + $0x374] sm:$0xf] }
  0xd5   :  { %2777 = vmatpush.bf16.msra.mxu0 %v3165_v17  ;;  %v3330_v17 = vld [vmem:[#allocation5 + $0x1b8] sm:$0xf0]  ;;  %v2551_v39 = vpop.f32.mrf.mxu2  ;;  %v2527_v56 = vpop.f32.mrf.mxu0 }
  0xd6   :  { %2790 = vmatpush.bf16.msra.mxu1 %v3229_v24  ;;  %v2539_v21 = vadd.f32 %v2538_v8, %v2526_v6  ;;  %v3141_v24 = vor.u32 %v4652_v3, %v3138_v4  ;;  %v3333_v53 = vor.u32 %v4700_v15, %v3330_v17  ;;  %v2540_v62 = vpop.f32.mrf.mxu1  ;;  %v4696_v3 = vld [vmem:[#allocation5 + $0x194] sm:$0xf]  ;;  %v3314_v4 = vld [vmem:[#allocation5 + $0x198] sm:$0xf0]  ;;  %v4646_v6 = vld [vmem:[#allocation5 + $0x4] sm:$0xf] }
  0xd7   :  { %2803 = vmatpush.bf16.msra.mxu2 %v3293_v26  ;;  %v3205_v26 = vor.u32 %v4668_v5, %v3202_v10  ;;  %v3125_v5 = vor.u32 %v4648_v59, %v3122_v60  ;;  %v3114_v8 = vld [vmem:[#allocation5 + $0x8] sm:$0xf0]  ;;  %v4678_v15 = vld [vmem:[#allocation5 + $0x104] sm:$0xf] }
  0xd8   :  { %2816 = vmatpush.bf16.msra.mxu3 %v3357_v36  ;;  %v4666_v36 = vld [vmem:[#allocation5 + $0xa4] sm:$0xf]  ;;  %v2552_v48 = vadd.f32 %v2551_v39, %v2539_v21  ;;  %v3317_v21 = vor.u32 %v4696_v3, %v3314_v4  ;;  %v4740_v39 = vld [vmem:[#allocation5 + $0x2f4] sm:$0xf]  ;;  %v3418_v60 = vld [vmem:[#allocation5 + $0x268] sm:$0xf0] }
  0xd9   :  { %2778 = vmatpush.bf16.msra.mxu0 %v3157_v50  ;;  %v2564_v50 = vpop.f32.mrf.mxu3  ;;  %v4722_v59 = vld [vmem:[#allocation5 + $0x264] sm:$0xf]  ;;  %v3610_v3 = vld [vmem:[#allocation5 + $0x3e8] sm:$0xf0] }
  0xda   :  { %2791 = vmatpush.bf16.msra.mxu1 %v3221_v51  ;;  %v4698_v51 = vld [vmem:[#allocation5 + $0x1a4] sm:$0xf]  ;;  %v5249_v55 = vadd.f32 %v2564_v50, %v2552_v48  ;;  %v3181_v48 = vor.u32 %v4662_v13, %v3178_v14  ;;  %v3421_v4 = vor.u32 %v4722_v59, %v3418_v60  ;;  %v3474_v14 = vld [vmem:[#allocation5 + $0x2d8] sm:$0xf0] }
  0xdb   :  { %2804 = vmatpush.bf16.msra.mxu2 %v3285_v52  ;;  %v3322_v52 = vld [vmem:[#allocation5 + $0x1a8] sm:$0xf0]  ;;  %v3458_v60 = vld [vmem:[#allocation5 + $0x2b8] sm:$0xf0] }
  0xdc   :  { %2817 = vmatpush.bf16.msra.mxu3 %v3349_v57  ;;  %v3197_v57 = vor.u32 %v4666_v36, %v3194_v40  ;;  %v3426_v36 = vld [vmem:[#allocation5 + $0x278] sm:$0xf0] }
  0xdd   :  { %2779 = vmatpush.bf16.msra.mxu0 %v3149_v63  ;;  %v3325_v63 = vor.u32 %v4698_v51, %v3322_v52  ;;  %v2553_v17 = vpop.f32.mrf.mxu2  ;;  %v3490_v40 = vld [vmem:[#allocation5 + $0x2f8] sm:$0xf0]  ;;  %v4772_v51 = vld [vmem:[#allocation5 + $0x3f4] sm:$0xf]  ;;  %v3429_v56 = vor.u32 %v4724_v34, %v3426_v36  ;;  %v4718_v34 = vld [vmem:[#allocation5 + $0x244] sm:$0xf] }
  0xde   :  { %2792 = vmatpush.bf16.msra.mxu1 %v3213_v1  ;;  %v4680_v1 = vld [vmem:[#allocation5 + $0x114] sm:$0xf]  ;;  %v3618_v52 = vld [vmem:[#allocation5 + $0x3f8] sm:$0xf0]  ;;  %v3402_v36 = vld [vmem:[#allocation5 + $0x248] sm:$0xf0] }
  0xdf   :  { %2805 = vmatpush.bf16.msra.mxu2 %v3277_v2  ;;  %v3250_v2 = vld [vmem:[#allocation5 + $0x118] sm:$0xf0]  ;;  %v3621_v62 = vor.u32 %v4772_v51, %v3618_v52 }
  0xe0   :  { %2818 = vmatpush.bf16.msra.mxu3 %v3341_v9  ;;  %v3189_v9 = vor.u32 %v4664_v61, %v3186_v0  ;;  %v3253_v10 = vor.u32 %v4680_v1, %v3250_v2  ;;  %v4738_v61 = vld [vmem:[#allocation5 + $0x2e4] sm:$0xf]  ;;  %v3546_v1 = vld [vmem:[#allocation5 + $0x368] sm:$0xf0]  ;;  %v3538_v17 = vld [vmem:[#allocation5 + $0x358] sm:$0xf0] }
  0xe1   :  { %2780 = vmatpush.bf16.msra.mxu0 %v3141_v24  ;;  %v3242_v24 = vld [vmem:[#allocation5 + $0x108] sm:$0xf0]  ;;  %v2566_v32 = vpop.f32.mrf.mxu3  ;;  %v4754_v0 = vld [vmem:[#allocation5 + $0x364] sm:$0xf] }
  0xe2   :  { %2793 = vmatpush.bf16.msra.mxu1 %v3205_v26  ;;  %v4694_v26 = vld [vmem:[#allocation5 + $0x184] sm:$0xf]  ;;  %v3245_v50 = vor.u32 %v4678_v15, %v3242_v24  ;;  %v4752_v15 = vld [vmem:[#allocation5 + $0x354] sm:$0xf]  ;;  %v3602_v24 = vld [vmem:[#allocation5 + $0x3d8] sm:$0xf0] }
  0xe3   :  { %2806 = vmatpush.bf16.msra.mxu2 %v3269_v27  ;;  %v3306_v27 = vld [vmem:[#allocation5 + $0x188] sm:$0xf0]  ;;  %v4770_v2 = vld [vmem:[#allocation5 + $0x3e4] sm:$0xf]  ;;  %v3541_v32 = vor.u32 %v4752_v15, %v3538_v17 }
  0xe4   :  { %2819 = vmatpush.bf16.msra.mxu3 %v3333_v53  ;;  %v3117_v53 = vor.u32 %v4646_v6, %v3114_v8  ;;  %v3549_v6 = vor.u32 %v4754_v0, %v3546_v1  ;;  %v4720_v8 = vld [vmem:[#allocation5 + $0x254] sm:$0xf]  ;;  %v3613_v13 = vor.u32 %v4770_v2, %v3610_v3  ;;  %v3586_v0 = vld [vmem:[#allocation5 + $0x3b8] sm:$0xf0]  ;;  %v4714_v3 = vld [vmem:[#allocation5 + $0x224] sm:$0xf] }
  0xe5   :  { %2781 = vmatpush.bf16.msra.mxu0 %v3133_v54  ;;  %v3309_v54 = vor.u32 %v4694_v26, %v3306_v27  ;;  %v4762_v17 = vld [vmem:[#allocation5 + $0x3a4] sm:$0xf] }
  0xe6   :  { %2794 = vmatpush.bf16.msra.mxu1 %v3197_v57  ;;  %v3493_v57 = vor.u32 %v4740_v39, %v3490_v40  ;;  %v4734_v39 = vld [vmem:[#allocation5 + $0x2c4] sm:$0xf] }
  0xe7   :  { %2807 = vmatpush.bf16.msra.mxu2 %v3261_v58  ;;  %v3557_v58 = vor.u32 %v4756_v43, %v3554_v47  ;;  %v4750_v40 = vld [vmem:[#allocation5 + $0x344] sm:$0xf]  ;;  %v3530_v43 = vld [vmem:[#allocation5 + $0x348] sm:$0xf0] }
  0xe8   :  { %2820 = vmatpush.bf16.msra.mxu3 %v3325_v63  ;;  %v3482_v63 = vld [vmem:[#allocation5 + $0x2e8] sm:$0xf0]  ;;  %v3533_v52 = vor.u32 %v4750_v40, %v3530_v43  ;;  %v3442_v43 = vld [vmem:[#allocation5 + $0x298] sm:$0xf0] }
  0xe9   :  { %2782 = vmatpush.bf16.msra.mxu0 %v3125_v5  ;;  %v3485_v5 = vor.u32 %v4738_v61, %v3482_v63  ;;  %v4748_v61 = vld [vmem:[#allocation5 + $0x334] sm:$0xf] }
  0xea   :  { %2795 = vmatpush.bf16.msra.mxu1 %v3189_v9  ;;  %v3410_v9 = vld [vmem:[#allocation5 + $0x258] sm:$0xf0]  ;;  %v4764_v63 = vld [vmem:[#allocation5 + $0x3b4] sm:$0xf] }
  0xeb   :  { %2808 = vmatpush.bf16.msra.mxu2 %v3253_v10  ;;  %v4736_v10 = vld [vmem:[#allocation5 + $0x2d4] sm:$0xf]  ;;  %v3413_v26 = vor.u32 %v4720_v8, %v3410_v9  ;;  %v3450_v9 = vld [vmem:[#allocation5 + $0x2a8] sm:$0xf0] }
  0xec   :  { %2821 = vmatpush.bf16.msra.mxu3 %v3317_v21  ;;  %v4768_v21 = vld [vmem:[#allocation5 + $0x3d4] sm:$0xf]  ;;  %v3477_v27 = vor.u32 %v4736_v10, %v3474_v14  ;;  %v4746_v10 = vld [vmem:[#allocation5 + $0x324] sm:$0xf] }
  0xed   :  { %2783 = vmatpush.bf16.msra.mxu0 %v3117_v53  ;;  %v3605_v53 = vor.u32 %v4768_v21, %v3602_v24  ;;  %v2577_v47 = vpop.f32.mrf.mxu0  ;;  %v3578_v21 = vld [vmem:[#allocation5 + $0x3a8] sm:$0xf0] }
  0xee   :  { %2796 = vmatpush.bf16.msra.mxu1 %v3181_v48  ;;  %v3594_v48 = vld [vmem:[#allocation5 + $0x3c8] sm:$0xf0]  ;;  %v3581_v40 = vor.u32 %v4762_v17, %v3578_v21 }
  0xef   :  { %2809 = vmatpush.bf16.msra.mxu2 %v3245_v50  ;;  %v3405_v50 = vor.u32 %v4718_v34, %v3402_v36 }
  0xf0   :  { %2822 = vmatpush.bf16.msra.mxu3 %v3309_v54  ;;  %2784 = vmatmul.bf16.vlgmr.msra.gmra.mxu0 %v5176_v19  ;;  %v4766_v19 = vld [vmem:[#allocation5 + $0x3c4] sm:$0xf]  ;;  %v4716_v54 = vld [vmem:[#allocation5 + $0x234] sm:$0xf] }
  0xf1   :  { %2828 = vmatpush.bf16.msrb.mxu0 %v3429_v56  ;;  %2797 = vmatmul.bf16.vlgmr.msra.gmra.mxu1 %v5180_v22  ;;  %v2590_v22 = vpop.f32.mrf.mxu1  ;;  %v3394_v56 = vld [vmem:[#allocation5 + $0x238] sm:$0xf0] }
  0xf2   :  { %2841 = vmatpush.bf16.msrb.mxu1 %v3493_v57  ;;  %2810 = vmatmul.bf16.vlgmr.msra.gmra.mxu2 %v5174_v18  ;;  %v3466_v18 = vld [vmem:[#allocation5 + $0x2c8] sm:$0xf0]  ;;  %v4732_v57 = vld [vmem:[#allocation5 + $0x2b4] sm:$0xf]  ;;  %v3397_v1 = vor.u32 %v4716_v54, %v3394_v56  ;;  %v4726_v56 = vld [vmem:[#allocation5 + $0x284] sm:$0xf] }
  0xf3   :  { %2854 = vmatpush.bf16.msrb.mxu2 %v3557_v58  ;;  %2823 = vmatmul.bf16.vlgmr.msra.gmra.mxu3 %v5178_v20  ;;  %v2578_v20 = vadd.f32 %v2577_v47, %v5249_v55  ;;  %v3469_v51 = vor.u32 %v4734_v39, %v3466_v18  ;;  %v3597_v58 = vor.u32 %v4766_v19, %v3594_v48  ;;  %v4712_v39 = vld [vmem:[#allocation5 + $0x214] sm:$0xf]  ;;  %v3506_v19 = vld [vmem:[#allocation5 + $0x318] sm:$0xf0] }
  0xf4   :  { %2867 = vmatpush.bf16.msrb.mxu3 %v3621_v62  ;;  %v3522_v62 = vld [vmem:[#allocation5 + $0x338] sm:$0xf0]  ;;  %v3461_v55 = vor.u32 %v4732_v57, %v3458_v60  ;;  %v4728_v18 = vld [vmem:[#allocation5 + $0x294] sm:$0xf]  ;;  %v3434_v57 = vld [vmem:[#allocation5 + $0x288] sm:$0xf0] }
  0xf5   :  { %2829 = vmatpush.bf16.msrb.mxu0 %v3421_v4  ;;  %v2591_v59 = vadd.f32 %v2590_v22, %v2578_v20  ;;  %v3525_v2 = vor.u32 %v4748_v61, %v3522_v62  ;;  %v3386_v4 = vld [vmem:[#allocation5 + $0x228] sm:$0xf0]  ;;  %v2603_v8 = vpop.f32.mrf.mxu2  ;;  %v2579_v24 = vpop.f32.mrf.mxu0  ;;  %v4744_v47 = vld [vmem:[#allocation5 + $0x314] sm:$0xf]  ;;  %v3570_v20 = vld [vmem:[#allocation5 + $0x398] sm:$0xf0] }
  0xf6   :  { %2842 = vmatpush.bf16.msrb.mxu1 %v3485_v5  ;;  %v4730_v5 = vld [vmem:[#allocation5 + $0x2a4] sm:$0xf]  ;;  %v2616_v15 = vpop.f32.mrf.mxu3  ;;  %v4760_v48 = vld [vmem:[#allocation5 + $0x394] sm:$0xf]  ;;  %v3509_v54 = vor.u32 %v4744_v47, %v3506_v19  ;;  %v3498_v60 = vld [vmem:[#allocation5 + $0x308] sm:$0xf0] }
  0xf7   :  { %2855 = vmatpush.bf16.msrb.mxu2 %v3549_v6  ;;  %v3589_v6 = vor.u32 %v4764_v63, %v3586_v0  ;;  %v2604_v14 = vadd.f32 %v2603_v8, %v2591_v59  ;;  %v3453_v34 = vor.u32 %v4730_v5, %v3450_v9  ;;  %v4710_v22 = vld [vmem:[#allocation5 + $0x204] sm:$0xf]  ;;  %v3573_v59 = vor.u32 %v4760_v48, %v3570_v20  ;;  %v3562_v62 = vld [vmem:[#allocation5 + $0x388] sm:$0xf0]  ;;  %v4788_v0 = vld [vmem:[#allocation5 + $0x474] sm:$0xf] }
  0xf8   :  { %2868 = vmatpush.bf16.msrb.mxu3 %v3613_v13  ;;  %v3514_v13 = vld [vmem:[#allocation5 + $0x328] sm:$0xf0]  ;;  %v4758_v61 = vld [vmem:[#allocation5 + $0x384] sm:$0xf]  ;;  %v4820_v5 = vld [vmem:[#allocation5 + $0x574] sm:$0xf]  ;;  %v3437_v8 = vor.u32 %v4726_v56, %v3434_v57 }
  0xf9   :  { %2830 = vmatpush.bf16.msrb.mxu0 %v3413_v26  ;;  %v3389_v26 = vor.u32 %v4714_v3, %v3386_v4  ;;  %v3517_v36 = vor.u32 %v4746_v10, %v3514_v13  ;;  %v3746_v4 = vld [vmem:[#allocation5 + $0x4f8] sm:$0xf0]  ;;  %v4836_v10 = vld [vmem:[#allocation5 + $0x5f4] sm:$0xf]  ;;  %v4786_v24 = vld [vmem:[#allocation5 + $0x464] sm:$0xf] }
  0xfa   :  { %2843 = vmatpush.bf16.msrb.mxu1 %v3477_v27  ;;  %v2592_v27 = vpop.f32.mrf.mxu1  ;;  %v3874_v13 = vld [vmem:[#allocation5 + $0x5f8] sm:$0xf0]  ;;  %v4784_v48 = vld [vmem:[#allocation5 + $0x454] sm:$0xf] }
  0xfb   :  { %2856 = vmatpush.bf16.msrb.mxu2 %v3541_v32  ;;  %v5256_v32 = vadd.f32 %v2616_v15, %v2604_v14  ;;  %v3565_v14 = vor.u32 %v4758_v61, %v3562_v62  ;;  %v4802_v27 = vld [vmem:[#allocation5 + $0x4e4] sm:$0xf]  ;;  %v3666_v20 = vld [vmem:[#allocation5 + $0x458] sm:$0xf0]  ;;  %v4832_v56 = vld [vmem:[#allocation5 + $0x5d4] sm:$0xf] }
  0xfc   :  { %2869 = vmatpush.bf16.msrb.mxu3 %v3605_v53  ;;  %v3378_v53 = vld [vmem:[#allocation5 + $0x218] sm:$0xf0]  ;;  %v4782_v61 = vld [vmem:[#allocation5 + $0x444] sm:$0xf]  ;;  %v3658_v62 = vld [vmem:[#allocation5 + $0x448] sm:$0xf0] }
  0xfd   :  { %2831 = vmatpush.bf16.msrb.mxu0 %v3405_v50  ;;  %v3381_v50 = vor.u32 %v4712_v39, %v3378_v53  ;;  %v2605_v63 = vpop.f32.mrf.mxu2  ;;  %v4818_v39 = vld [vmem:[#allocation5 + $0x564] sm:$0xf]  ;;  %v3802_v53 = vld [vmem:[#allocation5 + $0x568] sm:$0xf0]  ;;  %v3858_v57 = vld [vmem:[#allocation5 + $0x5d8] sm:$0xf0] }
  0xfe   :  { %2844 = vmatpush.bf16.msrb.mxu1 %v3469_v51  ;;  %v3370_v51 = vld [vmem:[#allocation5 + $0x208] sm:$0xf0]  ;;  %v3805_v19 = vor.u32 %v4818_v39, %v3802_v53  ;;  %v3861_v63 = vor.u32 %v4832_v56, %v3858_v57  ;;  %v4794_v53 = vld [vmem:[#allocation5 + $0x4a4] sm:$0xf] }
  0xff   :  { %2857 = vmatpush.bf16.msrb.mxu2 %v3533_v52  ;;  %v3445_v52 = vor.u32 %v4728_v18, %v3442_v43  ;;  %v3373_v3 = vor.u32 %v4710_v22, %v3370_v51  ;;  %v4834_v18 = vld [vmem:[#allocation5 + $0x5e4] sm:$0xf]  ;;  %v3730_v51 = vld [vmem:[#allocation5 + $0x4d8] sm:$0xf0]  ;;  %v3642_v39 = vld [vmem:[#allocation5 + $0x428] sm:$0xf0] }
 0x100   :  { %2870 = vmatpush.bf16.msrb.mxu3 %v3597_v58  ;;  %v4742_v58 = vld [vmem:[#allocation5 + $0x304] sm:$0xf] }
 0x101   :  { %2832 = vmatpush.bf16.msrb.mxu0 %v3397_v1  ;;  %v3682_v1 = vld [vmem:[#allocation5 + $0x478] sm:$0xf0]  ;;  %v3501_v9 = vor.u32 %v4742_v58, %v3498_v60  ;;  %v3669_v58 = vor.u32 %v4784_v48, %v3666_v20 }
 0x102   :  { %2845 = vmatpush.bf16.msrb.mxu1 %v3461_v55  ;;  %v4804_v55 = vld [vmem:[#allocation5 + $0x4f4] sm:$0xf]  ;;  %v3685_v15 = vor.u32 %v4788_v0, %v3682_v1  ;;  %v3722_v0 = vld [vmem:[#allocation5 + $0x4c8] sm:$0xf0]  ;;  %v4814_v1 = vld [vmem:[#allocation5 + $0x544] sm:$0xf] }
 0x103   :  { %2858 = vmatpush.bf16.msrb.mxu2 %v3525_v2  ;;  %v2618_v2 = vpop.f32.mrf.mxu3  ;;  %v3749_v17 = vor.u32 %v4804_v55, %v3746_v4  ;;  %v3786_v55 = vld [vmem:[#allocation5 + $0x548] sm:$0xf0]  ;;  %v3661_v4 = vor.u32 %v4782_v61, %v3658_v62  ;;  %v4792_v61 = vld [vmem:[#allocation5 + $0x494] sm:$0xf] }
 0x104   :  { %2871 = vmatpush.bf16.msrb.mxu3 %v3589_v6  ;;  %v3810_v6 = vld [vmem:[#allocation5 + $0x578] sm:$0xf0] }
 0x105   :  { %2833 = vmatpush.bf16.msrb.mxu0 %v3389_v26  ;;  %v3813_v21 = vor.u32 %v4820_v5, %v3810_v6  ;;  %v3674_v26 = vld [vmem:[#allocation5 + $0x468] sm:$0xf0]  ;;  %v3789_v6 = vor.u32 %v4814_v1, %v3786_v55  ;;  %v4824_v1 = vld [vmem:[#allocation5 + $0x594] sm:$0xf]  ;;  %v3826_v55 = vld [vmem:[#allocation5 + $0x598] sm:$0xf0] }
 0x106   :  { %2846 = vmatpush.bf16.msrb.mxu1 %v3453_v34  ;;  %v3877_v34 = vor.u32 %v4836_v10, %v3874_v13  ;;  %v3677_v43 = vor.u32 %v4786_v24, %v3674_v26  ;;  %v4796_v10 = vld [vmem:[#allocation5 + $0x4b4] sm:$0xf]  ;;  %v3842_v26 = vld [vmem:[#allocation5 + $0x5b8] sm:$0xf0] }
 0x107   :  { %2859 = vmatpush.bf16.msrb.mxu2 %v3517_v36  ;;  %v3738_v36 = vld [vmem:[#allocation5 + $0x4e8] sm:$0xf0]  ;;  %v4828_v24 = vld [vmem:[#allocation5 + $0x5b4] sm:$0xf] }
 0x108   :  { %2872 = vmatpush.bf16.msrb.mxu3 %v3581_v40  ;;  %v3866_v40 = vld [vmem:[#allocation5 + $0x5e8] sm:$0xf0]  ;;  %v3741_v47 = vor.u32 %v4802_v27, %v3738_v36  ;;  %v4778_v36 = vld [vmem:[#allocation5 + $0x424] sm:$0xf] }
 0x109   :  { %2834 = vmatpush.bf16.msrb.mxu0 %v3381_v50  ;;  %v4800_v50 = vld [vmem:[#allocation5 + $0x4d4] sm:$0xf]  ;;  %v3869_v22 = vor.u32 %v4834_v18, %v3866_v40  ;;  %v3845_v18 = vor.u32 %v4828_v24, %v3842_v26 }
 0x10a   :  { %2847 = vmatpush.bf16.msrb.mxu1 %v3445_v52  ;;  %v4816_v52 = vld [vmem:[#allocation5 + $0x554] sm:$0xf] }
 0x10b   :  { %2860 = vmatpush.bf16.msrb.mxu2 %v3509_v54  ;;  %v3794_v54 = vld [vmem:[#allocation5 + $0x558] sm:$0xf0] }
 0x10c   :  { %2873 = vmatpush.bf16.msrb.mxu3 %v3573_v59  ;;  %v3733_v59 = vor.u32 %v4800_v50, %v3730_v51  ;;  %v3797_v60 = vor.u32 %v4816_v52, %v3794_v54  ;;  %v4826_v50 = vld [vmem:[#allocation5 + $0x5a4] sm:$0xf]  ;;  %v3645_v52 = vor.u32 %v4778_v36, %v3642_v39 }
 0x10d   :  { %2835 = vmatpush.bf16.msrb.mxu0 %v3373_v3  ;;  %v2629_v2 = vpop.f32.mrf.mxu0  ;;  %v3850_v3 = vld [vmem:[#allocation5 + $0x5c8] sm:$0xf0] }
 0x10e   :  { %2848 = vmatpush.bf16.msrb.mxu1 %v3437_v8  ;;  %v4780_v8 = vld [vmem:[#allocation5 + $0x434] sm:$0xf] }
 0x10f   :  { %2861 = vmatpush.bf16.msrb.mxu2 %v3501_v9  ;;  %v3650_v9 = vld [vmem:[#allocation5 + $0x438] sm:$0xf0] }
 0x110   :  { %2874 = vmatpush.bf16.msrb.mxu3 %v3565_v14  ;;  %2836 = vmatmul.bf16.vlgmr.msrb.gmra.mxu0 %v5188_v41  ;;  %v4830_v41 = vld [vmem:[#allocation5 + $0x5c4] sm:$0xf]  ;;  %v3653_v27 = vor.u32 %v4780_v8, %v3650_v9  ;;  %v3829_v8 = vor.u32 %v4824_v1, %v3826_v55  ;;  %v3754_v9 = vld [vmem:[#allocation5 + $0x508] sm:$0xf0]  ;;  %v3986_v1 = vld [vmem:[#allocation5 + $0x6d8] sm:$0xf0] }
 0x111   :  { %2880 = vmatpush.bf16.msra.mxu0 %v3685_v15  ;;  %2849 = vmatmul.bf16.vlgmr.msrb.gmra.mxu1 %v5192_v44  ;;  %v2642_v44 = vpop.f32.mrf.mxu1  ;;  %v3853_v13 = vor.u32 %v4830_v41, %v3850_v3  ;;  %v3714_v15 = vld [vmem:[#allocation5 + $0x4b8] sm:$0xf0]  ;;  %v4774_v41 = vld [vmem:[#allocation5 + $0x404] sm:$0xf]  ;;  %v3626_v3 = vld [vmem:[#allocation5 + $0x408] sm:$0xf0] }
 0x112   :  { %2893 = vmatpush.bf16.msra.mxu1 %v3749_v17  ;;  %2862 = vmatmul.bf16.vlgmr.msrb.gmra.mxu2 %v5186_v38  ;;  %v4798_v38 = vld [vmem:[#allocation5 + $0x4c4] sm:$0xf]  ;;  %v4812_v17 = vld [vmem:[#allocation5 + $0x534] sm:$0xf]  ;;  %v3629_v26 = vor.u32 %v4774_v41, %v3626_v3  ;;  %v4114_v3 = vld [vmem:[#allocation5 + $0x7d8] sm:$0xf0] }
 0x113   :  { %2906 = vmatpush.bf16.msra.mxu2 %v3813_v21  ;;  %2875 = vmatmul.bf16.vlgmr.msrb.gmra.mxu3 %v5190_v42  ;;  %v2630_v42 = vadd.f32 %v2629_v2, %v5256_v32  ;;  %v3725_v5 = vor.u32 %v4798_v38, %v3722_v0  ;;  %v3778_v21 = vld [vmem:[#allocation5 + $0x538] sm:$0xf0]  ;;  %v3717_v32 = vor.u32 %v4796_v10, %v3714_v15  ;;  %v4822_v10 = vld [vmem:[#allocation5 + $0x584] sm:$0xf]  ;;  %v4852_v15 = vld [vmem:[#allocation5 + $0x674] sm:$0xf] }
 0x114   :  { %2919 = vmatpush.bf16.msra.mxu3 %v3877_v34  ;;  %v3781_v34 = vor.u32 %v4812_v17, %v3778_v21  ;;  %v3698_v38 = vld [vmem:[#allocation5 + $0x498] sm:$0xf0]  ;;  %v4868_v21 = vld [vmem:[#allocation5 + $0x6f4] sm:$0xf] }
 0x115   :  { %2881 = vmatpush.bf16.msra.mxu0 %v3677_v43  ;;  %v2643_v14 = vadd.f32 %v2642_v44, %v2630_v42  ;;  %v2655_v40 = vpop.f32.mrf.mxu2  ;;  %v3706_v43 = vld [vmem:[#allocation5 + $0x4a8] sm:$0xf0]  ;;  %v2631_v51 = vpop.f32.mrf.mxu0  ;;  %v3762_v0 = vld [vmem:[#allocation5 + $0x518] sm:$0xf0]  ;;  %v3701_v42 = vor.u32 %v4792_v61, %v3698_v38  ;;  %v4790_v44 = vld [vmem:[#allocation5 + $0x484] sm:$0xf] }
 0x116   :  { %2894 = vmatpush.bf16.msra.mxu1 %v3741_v47  ;;  %v4810_v47 = vld [vmem:[#allocation5 + $0x524] sm:$0xf]  ;;  %v2668_v20 = vpop.f32.mrf.mxu3  ;;  %v3709_v57 = vor.u32 %v4794_v53, %v3706_v43  ;;  %v3938_v17 = vld [vmem:[#allocation5 + $0x678] sm:$0xf0]  ;;  %v4900_v53 = vld [vmem:[#allocation5 + $0x7f4] sm:$0xf] }
 0x117   :  { %2907 = vmatpush.bf16.msra.mxu2 %v3805_v19  ;;  %v3770_v19 = vld [vmem:[#allocation5 + $0x528] sm:$0xf0]  ;;  %v2656_v48 = vadd.f32 %v2655_v40, %v2643_v14  ;;  %v3941_v43 = vor.u32 %v4852_v15, %v3938_v17  ;;  %v3922_v38 = vld [vmem:[#allocation5 + $0x658] sm:$0xf0]  ;;  %v4880_v55 = vld [vmem:[#allocation5 + $0x754] sm:$0xf] }
 0x118   :  { %2920 = vmatpush.bf16.msra.mxu3 %v3869_v22  ;;  %v3834_v22 = vld [vmem:[#allocation5 + $0x5a8] sm:$0xf0]  ;;  %v4896_v41 = vld [vmem:[#allocation5 + $0x7d4] sm:$0xf] }
 0x119   :  { %2882 = vmatpush.bf16.msra.mxu0 %v3669_v58  ;;  %v2644_v54 = vpop.f32.mrf.mxu1  ;;  %v5263_v56 = vadd.f32 %v2668_v20, %v2656_v48  ;;  %v3773_v58 = vor.u32 %v4810_v47, %v3770_v19  ;;  %v3837_v62 = vor.u32 %v4826_v50, %v3834_v22  ;;  %v4850_v48 = vld [vmem:[#allocation5 + $0x664] sm:$0xf]  ;;  %v3930_v20 = vld [vmem:[#allocation5 + $0x668] sm:$0xf0] }
 0x11a   :  { %2895 = vmatpush.bf16.msra.mxu1 %v3733_v59  ;;  %v4776_v59 = vld [vmem:[#allocation5 + $0x414] sm:$0xf]  ;;  %v4866_v50 = vld [vmem:[#allocation5 + $0x6e4] sm:$0xf]  ;;  %v3994_v51 = vld [vmem:[#allocation5 + $0x6e8] sm:$0xf0] }
 0x11b   :  { %2908 = vmatpush.bf16.msra.mxu2 %v3797_v60  ;;  %v3634_v60 = vld [vmem:[#allocation5 + $0x418] sm:$0xf0]  ;;  %v4058_v54 = vld [vmem:[#allocation5 + $0x768] sm:$0xf0] }
 0x11c   :  { %2921 = vmatpush.bf16.msra.mxu3 %v3861_v63  ;;  %v4808_v63 = vld [vmem:[#allocation5 + $0x514] sm:$0xf]  ;;  %v3637_v2 = vor.u32 %v4776_v59, %v3634_v60  ;;  %v3933_v59 = vor.u32 %v4850_v48, %v3930_v20  ;;  %v3997_v60 = vor.u32 %v4866_v50, %v3994_v51  ;;  %v4842_v48 = vld [vmem:[#allocation5 + $0x624] sm:$0xf]  ;;  %v3898_v20 = vld [vmem:[#allocation5 + $0x628] sm:$0xf0] }
 0x11d   :  { %2883 = vmatpush.bf16.msra.mxu0 %v3661_v4  ;;  %v3765_v4 = vor.u32 %v4808_v63, %v3762_v0  ;;  %v2657_v14 = vpop.f32.mrf.mxu2  ;;  %v4864_v63 = vld [vmem:[#allocation5 + $0x6d4] sm:$0xf]  ;;  %v4858_v50 = vld [vmem:[#allocation5 + $0x6a4] sm:$0xf] }
 0x11e   :  { %2896 = vmatpush.bf16.msra.mxu1 %v3725_v5  ;;  %v3690_v5 = vld [vmem:[#allocation5 + $0x488] sm:$0xf0]  ;;  %v2670_v24 = vpop.f32.mrf.mxu3 }
 0x11f   :  { %2909 = vmatpush.bf16.msra.mxu2 %v3789_v6  ;;  %v4806_v6 = vld [vmem:[#allocation5 + $0x504] sm:$0xf]  ;;  %v3693_v36 = vor.u32 %v4790_v44, %v3690_v5  ;;  %v4106_v14 = vld [vmem:[#allocation5 + $0x7c8] sm:$0xf0] }
 0x120   :  { %2922 = vmatpush.bf16.msra.mxu3 %v3853_v13  ;;  %v3818_v13 = vld [vmem:[#allocation5 + $0x588] sm:$0xf0]  ;;  %v3757_v39 = vor.u32 %v4806_v6, %v3754_v9  ;;  %v4846_v5 = vld [vmem:[#allocation5 + $0x644] sm:$0xf] }
 0x121   :  { %2884 = vmatpush.bf16.msra.mxu0 %v3653_v27  ;;  %v4002_v27 = vld [vmem:[#allocation5 + $0x6f8] sm:$0xf0]  ;;  %v3821_v40 = vor.u32 %v4822_v10, %v3818_v13  ;;  %v4862_v6 = vld [vmem:[#allocation5 + $0x6c4] sm:$0xf]  ;;  %v3978_v9 = vld [vmem:[#allocation5 + $0x6c8] sm:$0xf0] }
 0x122   :  { %2897 = vmatpush.bf16.msra.mxu1 %v3717_v32  ;;  %v4884_v32 = vld [vmem:[#allocation5 + $0x774] sm:$0xf]  ;;  %v4005_v47 = vor.u32 %v4868_v21, %v4002_v27  ;;  %v4878_v10 = vld [vmem:[#allocation5 + $0x744] sm:$0xf]  ;;  %v3981_v21 = vor.u32 %v4862_v6, %v3978_v9  ;;  %v3906_v27 = vld [vmem:[#allocation5 + $0x638] sm:$0xf0] }
 0x123   :  { %2910 = vmatpush.bf16.msra.mxu2 %v3781_v34  ;;  %v4066_v34 = vld [vmem:[#allocation5 + $0x778] sm:$0xf0]  ;;  %v4838_v9 = vld [vmem:[#allocation5 + $0x604] sm:$0xf] }
 0x124   :  { %2923 = vmatpush.bf16.msra.mxu3 %v3845_v18  ;;  %v4130_v18 = vld [vmem:[#allocation5 + $0x7f8] sm:$0xf0]  ;;  %v4069_v19 = vor.u32 %v4884_v32, %v4066_v34  ;;  %v4860_v32 = vld [vmem:[#allocation5 + $0x6b4] sm:$0xf] }
 0x125   :  { %2885 = vmatpush.bf16.msra.mxu0 %v3645_v52  ;;  %v4133_v22 = vor.u32 %v4900_v53, %v4130_v18  ;;  %v4882_v52 = vld [vmem:[#allocation5 + $0x764] sm:$0xf]  ;;  %v4876_v53 = vld [vmem:[#allocation5 + $0x734] sm:$0xf]  ;;  %v4034_v18 = vld [vmem:[#allocation5 + $0x738] sm:$0xf0] }
 0x126   :  { %2898 = vmatpush.bf16.msra.mxu1 %v3709_v57  ;;  %v4898_v57 = vld [vmem:[#allocation5 + $0x7e4] sm:$0xf]  ;;  %v4061_v61 = vor.u32 %v4882_v52, %v4058_v54  ;;  %v3962_v52 = vld [vmem:[#allocation5 + $0x6a8] sm:$0xf0]  ;;  %v4082_v6 = vld [vmem:[#allocation5 + $0x798] sm:$0xf0] }
 0x127   :  { %2911 = vmatpush.bf16.msra.mxu2 %v3773_v58  ;;  %v4122_v58 = vld [vmem:[#allocation5 + $0x7e8] sm:$0xf0]  ;;  %v4874_v54 = vld [vmem:[#allocation5 + $0x724] sm:$0xf] }
 0x128   :  { %2924 = vmatpush.bf16.msra.mxu3 %v3837_v62  ;;  %v4848_v62 = vld [vmem:[#allocation5 + $0x654] sm:$0xf]  ;;  %v4125_v0 = vor.u32 %v4898_v57, %v4122_v58  ;;  %v4026_v57 = vld [vmem:[#allocation5 + $0x728] sm:$0xf0] }
 0x129   :  { %2886 = vmatpush.bf16.msra.mxu0 %v3637_v2  ;;  %v4050_v2 = vld [vmem:[#allocation5 + $0x758] sm:$0xf0] }
 0x12a   :  { %2899 = vmatpush.bf16.msra.mxu1 %v3701_v42  ;;  %v3925_v42 = vor.u32 %v4848_v62, %v3922_v38  ;;  %v4053_v44 = vor.u32 %v4880_v55, %v4050_v2  ;;  %v3901_v38 = vor.u32 %v4842_v48, %v3898_v20  ;;  %v4029_v55 = vor.u32 %v4874_v54, %v4026_v57  ;;  %v4840_v2 = vld [vmem:[#allocation5 + $0x614] sm:$0xf]  ;;  %v4930_v54 = vld [vmem:[#allocation5 + $0x8e4] sm:$0xf] }
 0x12b   :  { %2912 = vmatpush.bf16.msra.mxu2 %v3765_v4  ;;  %v3989_v4 = vor.u32 %v4864_v63, %v3986_v1  ;;  %v3965_v1 = vor.u32 %v4858_v50, %v3962_v52  ;;  %v4186_v52 = vld [vmem:[#allocation5 + $0x868] sm:$0xf0] }
 0x12c   :  { %2925 = vmatpush.bf16.msra.mxu3 %v3829_v8  ;;  %v4117_v8 = vor.u32 %v4896_v41, %v4114_v3  ;;  %v3890_v41 = vld [vmem:[#allocation5 + $0x618] sm:$0xf0]  ;;  %v4856_v3 = vld [vmem:[#allocation5 + $0x694] sm:$0xf] }
 0x12d   :  { %2887 = vmatpush.bf16.msra.mxu0 %v3629_v26  ;;  %v2681_v13 = vpop.f32.mrf.mxu0  ;;  %v4844_v26 = vld [vmem:[#allocation5 + $0x634] sm:$0xf] }
 0x12e   :  { %2900 = vmatpush.bf16.msra.mxu1 %v3693_v36  ;;  %v2694_v17 = vpop.f32.mrf.mxu1 }
 0x12f   :  { %2913 = vmatpush.bf16.msra.mxu2 %v3757_v39  ;;  %v3970_v39 = vld [vmem:[#allocation5 + $0x6b8] sm:$0xf0] }
 0x130   :  { %2926 = vmatpush.bf16.msra.mxu3 %v3821_v40  ;;  %2888 = vmatmul.bf16.vlgmr.msra.gmra.mxu0 %v5198_v25  ;;  %v3914_v25 = vld [vmem:[#allocation5 + $0x648] sm:$0xf0]  ;;  %v4892_v40 = vld [vmem:[#allocation5 + $0x7b4] sm:$0xf] }
 0x131   :  { %2932 = vmatpush.bf16.msrb.mxu0 %v3941_v43  ;;  %2901 = vmatmul.bf16.vlgmr.msra.gmra.mxu1 %v5202_v30  ;;  %v4894_v30 = vld [vmem:[#allocation5 + $0x7c4] sm:$0xf]  ;;  %v3917_v15 = vor.u32 %v4846_v5, %v3914_v25  ;;  %v4098_v43 = vld [vmem:[#allocation5 + $0x7b8] sm:$0xf0]  ;;  %v4888_v25 = vld [vmem:[#allocation5 + $0x794] sm:$0xf] }
 0x132   :  { %2945 = vmatpush.bf16.msrb.mxu1 %v4005_v47  ;;  %2914 = vmatmul.bf16.vlgmr.msra.gmra.mxu2 %v5200_v29  ;;  %v4042_v29 = vld [vmem:[#allocation5 + $0x748] sm:$0xf0]  ;;  %v4109_v34 = vor.u32 %v4894_v30, %v4106_v14  ;;  %v3909_v47 = vor.u32 %v4844_v26, %v3906_v27  ;;  %v4018_v5 = vld [vmem:[#allocation5 + $0x718] sm:$0xf0]  ;;  %v4854_v30 = vld [vmem:[#allocation5 + $0x684] sm:$0xf] }
 0x133   :  { %2958 = vmatpush.bf16.msrb.mxu2 %v4069_v19  ;;  %2927 = vmatmul.bf16.vlgmr.msra.gmra.mxu3 %v5204_v33  ;;  %v2682_v33 = vadd.f32 %v2681_v13, %v5263_v56  ;;  %v4045_v24 = vor.u32 %v4878_v10, %v4042_v29  ;;  %v3973_v56 = vor.u32 %v4860_v32, %v3970_v39  ;;  %v3882_v10 = vld [vmem:[#allocation5 + $0x608] sm:$0xf0]  ;;  %v4916_v27 = vld [vmem:[#allocation5 + $0x874] sm:$0xf]  ;;  %v4194_v32 = vld [vmem:[#allocation5 + $0x878] sm:$0xf0] }
 0x134   :  { %2971 = vmatpush.bf16.msrb.mxu3 %v4133_v22  ;;  %v4037_v19 = vor.u32 %v4876_v53, %v4034_v18  ;;  %v4101_v22 = vor.u32 %v4892_v40, %v4098_v43  ;;  %v3946_v14 = vld [vmem:[#allocation5 + $0x688] sm:$0xf0]  ;;  %v3885_v39 = vor.u32 %v4838_v9, %v3882_v10  ;;  %v4258_v53 = vld [vmem:[#allocation5 + $0x8f8] sm:$0xf0]  ;;  %v4948_v18 = vld [vmem:[#allocation5 + $0x974] sm:$0xf]  ;;  %v4197_v20 = vor.u32 %v4916_v27, %v4194_v32 }
 0x135   :  { %2933 = vmatpush.bf16.msrb.mxu0 %v3933_v59  ;;  %v2695_v36 = vadd.f32 %v2694_v17, %v2682_v33  ;;  %v2707_v51 = vpop.f32.mrf.mxu2  ;;  %v2683_v62 = vpop.f32.mrf.mxu0  ;;  %v4870_v33 = vld [vmem:[#allocation5 + $0x704] sm:$0xf]  ;;  %v4010_v17 = vld [vmem:[#allocation5 + $0x708] sm:$0xf0]  ;;  %v4322_v40 = vld [vmem:[#allocation5 + $0x978] sm:$0xf0]  ;;  %v3949_v43 = vor.u32 %v4854_v30, %v3946_v14 }
 0x136   :  { %2946 = vmatpush.bf16.msrb.mxu1 %v3997_v60  ;;  %v2720_v59 = vpop.f32.mrf.mxu3  ;;  %v4890_v60 = vld [vmem:[#allocation5 + $0x7a4] sm:$0xf]  ;;  %v2696_v63 = vpop.f32.mrf.mxu1  ;;  %v4378_v62 = vld [vmem:[#allocation5 + $0x9e8] sm:$0xf0]  ;;  %v4908_v27 = vld [vmem:[#allocation5 + $0x834] sm:$0xf] }
 0x137   :  { %2959 = vmatpush.bf16.msrb.mxu2 %v4061_v61  ;;  %v2708_v58 = vadd.f32 %v2707_v51, %v2695_v36  ;;  %v4090_v61 = vld [vmem:[#allocation5 + $0x7a8] sm:$0xf0]  ;;  %v4914_v51 = vld [vmem:[#allocation5 + $0x864] sm:$0xf]  ;;  %v4162_v32 = vld [vmem:[#allocation5 + $0x838] sm:$0xf0] }
 0x138   :  { %2972 = vmatpush.bf16.msrb.mxu3 %v4125_v0  ;;  %v4910_v10 = vld [vmem:[#allocation5 + $0x844] sm:$0xf]  ;;  %v4234_v30 = vld [vmem:[#allocation5 + $0x8c8] sm:$0xf0] }
 0x139   :  { %2934 = vmatpush.bf16.msrb.mxu0 %v3925_v42  ;;  %v5270_v0 = vadd.f32 %v2720_v59, %v2708_v58  ;;  %v4093_v42 = vor.u32 %v4890_v60, %v4090_v61  ;;  %v4250_v58 = vld [vmem:[#allocation5 + $0x8e8] sm:$0xf0]  ;;  %v4946_v59 = vld [vmem:[#allocation5 + $0x964] sm:$0xf] }
 0x13a   :  { %2947 = vmatpush.bf16.msrb.mxu1 %v3989_v4  ;;  %v3954_v4 = vld [vmem:[#allocation5 + $0x698] sm:$0xf0]  ;;  %v4314_v60 = vld [vmem:[#allocation5 + $0x968] sm:$0xf0]  ;;  %v4962_v61 = vld [vmem:[#allocation5 + $0x9e4] sm:$0xf]  ;;  %v4253_v63 = vor.u32 %v4930_v54, %v4250_v58 }
 0x13b   :  { %2960 = vmatpush.bf16.msrb.mxu2 %v4053_v44  ;;  %v4872_v44 = vld [vmem:[#allocation5 + $0x714] sm:$0xf]  ;;  %v3957_v29 = vor.u32 %v4856_v3, %v3954_v4  ;;  %v4381_v3 = vor.u32 %v4962_v61, %v4378_v62  ;;  %v4942_v14 = vld [vmem:[#allocation5 + $0x944] sm:$0xf]  ;;  %v4346_v61 = vld [vmem:[#allocation5 + $0x9a8] sm:$0xf0] }
 0x13c   :  { %2973 = vmatpush.bf16.msrb.mxu3 %v4117_v8  ;;  %v3893_v8 = vor.u32 %v4840_v2, %v3890_v41  ;;  %v4021_v13 = vor.u32 %v4872_v44, %v4018_v5  ;;  %v4178_v2 = vld [vmem:[#allocation5 + $0x858] sm:$0xf0]  ;;  %v4928_v41 = vld [vmem:[#allocation5 + $0x8d4] sm:$0xf]  ;;  %v4938_v54 = vld [vmem:[#allocation5 + $0x924] sm:$0xf] }
 0x13d   :  { %2935 = vmatpush.bf16.msrb.mxu0 %v3917_v15  ;;  %v4085_v15 = vor.u32 %v4888_v25, %v4082_v6  ;;  %v2709_v26 = vpop.f32.mrf.mxu2  ;;  %v4944_v4 = vld [vmem:[#allocation5 + $0x954] sm:$0xf]  ;;  %v4306_v44 = vld [vmem:[#allocation5 + $0x958] sm:$0xf0] }
 0x13e   :  { %2948 = vmatpush.bf16.msrb.mxu1 %v3981_v21  ;;  %v4886_v21 = vld [vmem:[#allocation5 + $0x784] sm:$0xf]  ;;  %v2722_v36 = vpop.f32.mrf.mxu3  ;;  %v4960_v5 = vld [vmem:[#allocation5 + $0x9d4] sm:$0xf]  ;;  %v4370_v25 = vld [vmem:[#allocation5 + $0x9d8] sm:$0xf0]  ;;  %v4309_v9 = vor.u32 %v4944_v4, %v4306_v44 }
 0x13f   :  { %2961 = vmatpush.bf16.msrb.mxu2 %v4045_v24  ;;  %v4074_v24 = vld [vmem:[#allocation5 + $0x788] sm:$0xf0]  ;;  %v4210_v44 = vld [vmem:[#allocation5 + $0x898] sm:$0xf0] }
 0x140   :  { %2974 = vmatpush.bf16.msrb.mxu3 %v4109_v34  ;;  %v4932_v34 = vld [vmem:[#allocation5 + $0x8f4] sm:$0xf]  ;;  %v4077_v48 = vor.u32 %v4886_v21, %v4074_v24 }
 0x141   :  { %2936 = vmatpush.bf16.msrb.mxu0 %v3909_v47  ;;  %v4013_v47 = vor.u32 %v4870_v33, %v4010_v17  ;;  %v4261_v50 = vor.u32 %v4932_v34, %v4258_v53  ;;  %v4924_v34 = vld [vmem:[#allocation5 + $0x8b4] sm:$0xf]  ;;  %v4226_v53 = vld [vmem:[#allocation5 + $0x8b8] sm:$0xf0] }
 0x142   :  { %2949 = vmatpush.bf16.msrb.mxu1 %v3973_v56  ;;  %v4964_v56 = vld [vmem:[#allocation5 + $0x9f4] sm:$0xf] }
 0x143   :  { %2962 = vmatpush.bf16.msrb.mxu2 %v4037_v19  ;;  %v4386_v19 = vld [vmem:[#allocation5 + $0x9f8] sm:$0xf0] }
 0x144   :  { %2975 = vmatpush.bf16.msrb.mxu3 %v4101_v22  ;;  %v4325_v22 = vor.u32 %v4948_v18, %v4322_v40  ;;  %v4389_v57 = vor.u32 %v4964_v56, %v4386_v19  ;;  %v4940_v18 = vld [vmem:[#allocation5 + $0x934] sm:$0xf]  ;;  %v4290_v40 = vld [vmem:[#allocation5 + $0x938] sm:$0xf0]  ;;  %v4165_v56 = vor.u32 %v4908_v27, %v4162_v32 }
 0x145   :  { %2937 = vmatpush.bf16.msrb.mxu0 %v3901_v38  ;;  %v4189_v38 = vor.u32 %v4914_v51, %v4186_v52  ;;  %v4293_v19 = vor.u32 %v4940_v18, %v4290_v40  ;;  %v4218_v52 = vld [vmem:[#allocation5 + $0x8a8] sm:$0xf0]  ;;  %v5028_v40 = vld [vmem:[#allocation5 + $0xbf4] sm:$0xf] }
 0x146   :  { %2950 = vmatpush.bf16.msrb.mxu1 %v3965_v1  ;;  %v4317_v1 = vor.u32 %v4946_v59, %v4314_v60  ;;  %v4954_v60 = vld [vmem:[#allocation5 + $0x9a4] sm:$0xf] }
 0x147   :  { %2963 = vmatpush.bf16.msrb.mxu2 %v4029_v55  ;;  %v4912_v55 = vld [vmem:[#allocation5 + $0x854] sm:$0xf]  ;;  %v4349_v4 = vor.u32 %v4954_v60, %v4346_v61 }
 0x148   :  { %2976 = vmatpush.bf16.msrb.mxu3 %v4093_v42  ;;  %v4242_v42 = vld [vmem:[#allocation5 + $0x8d8] sm:$0xf0]  ;;  %v4181_v6 = vor.u32 %v4912_v55, %v4178_v2 }
 0x149   :  { %2938 = vmatpush.bf16.msrb.mxu0 %v3893_v8  ;;  %v4245_v8 = vor.u32 %v4928_v41, %v4242_v42  ;;  %v4904_v41 = vld [vmem:[#allocation5 + $0x814] sm:$0xf] }
 0x14a   :  { %2951 = vmatpush.bf16.msrb.mxu1 %v3957_v29  ;;  %v4926_v29 = vld [vmem:[#allocation5 + $0x8c4] sm:$0xf]  ;;  %v4920_v42 = vld [vmem:[#allocation5 + $0x894] sm:$0xf] }
 0x14b   :  { %2964 = vmatpush.bf16.msrb.mxu2 %v4021_v13  ;;  %v4373_v13 = vor.u32 %v4960_v5, %v4370_v25  ;;  %v4237_v24 = vor.u32 %v4926_v29, %v4234_v30  ;;  %v4936_v5 = vld [vmem:[#allocation5 + $0x914] sm:$0xf]  ;;  %v4274_v25 = vld [vmem:[#allocation5 + $0x918] sm:$0xf0]  ;;  %v4213_v29 = vor.u32 %v4920_v42, %v4210_v44  ;;  %v4918_v30 = vld [vmem:[#allocation5 + $0x884] sm:$0xf] }
 0x14c   :  { %2977 = vmatpush.bf16.msrb.mxu3 %v4085_v15  ;;  %v4362_v15 = vld [vmem:[#allocation5 + $0x9c8] sm:$0xf0]  ;;  %v5024_v42 = vld [vmem:[#allocation5 + $0xbd4] sm:$0xf] }
 0x14d   :  { %2939 = vmatpush.bf16.msrb.mxu0 %v3885_v39  ;;  %v2733_v33 = vpop.f32.mrf.mxu0 }
 0x14e   :  { %2952 = vmatpush.bf16.msrb.mxu1 %v3949_v43  ;;  %v2746_v21 = vpop.f32.mrf.mxu1  ;;  %v4956_v43 = vld [vmem:[#allocation5 + $0x9b4] sm:$0xf] }
 0x14f   :  { %2965 = vmatpush.bf16.msrb.mxu2 %v4013_v47  ;;  %v4354_v47 = vld [vmem:[#allocation5 + $0x9b8] sm:$0xf0] }
 0x150   :  { %2978 = vmatpush.bf16.msrb.mxu3 %v4077_v48  ;;  %2940 = vmatmul.bf16.vlgmr.msrb.gmra.mxu0 %v5210_v23  ;;  %v4170_v23 = vld [vmem:[#allocation5 + $0x848] sm:$0xf0]  ;;  %v4906_v48 = vld [vmem:[#allocation5 + $0x824] sm:$0xf] }
 0x151   :  { %2984 = vmatpush.bf16.msra.mxu0 %v4197_v20  ;;  %2953 = vmatmul.bf16.vlgmr.msrb.gmra.mxu1 %v5214_v31  ;;  %v4958_v31 = vld [vmem:[#allocation5 + $0x9c4] sm:$0xf]  ;;  %v4173_v17 = vor.u32 %v4910_v10, %v4170_v23  ;;  %v4154_v20 = vld [vmem:[#allocation5 + $0x828] sm:$0xf0] }
 0x152   :  { %2997 = vmatpush.bf16.msra.mxu1 %v4261_v50  ;;  %2966 = vmatmul.bf16.vlgmr.msrb.gmra.mxu2 %v5212_v28  ;;  %v4298_v28 = vld [vmem:[#allocation5 + $0x948] sm:$0xf0]  ;;  %v4365_v36 = vor.u32 %v4958_v31, %v4362_v15  ;;  %v4922_v50 = vld [vmem:[#allocation5 + $0x8a4] sm:$0xf] }
 0x153   :  { %3010 = vmatpush.bf16.msra.mxu2 %v4325_v22  ;;  %2979 = vmatmul.bf16.vlgmr.msrb.gmra.mxu3 %v5216_v35  ;;  %v2734_v35 = vadd.f32 %v2733_v33, %v5270_v0  ;;  %v4301_v26 = vor.u32 %v4942_v14, %v4298_v28  ;;  %v4229_v0 = vor.u32 %v4924_v34, %v4226_v53  ;;  %v4902_v10 = vld [vmem:[#allocation5 + $0x804] sm:$0xf]  ;;  %v4138_v23 = vld [vmem:[#allocation5 + $0x808] sm:$0xf0]  ;;  %v4514_v34 = vld [vmem:[#allocation5 + $0xaf8] sm:$0xf0] }
 0x154   :  { %3023 = vmatpush.bf16.msra.mxu3 %v4389_v57  ;;  %v4357_v22 = vor.u32 %v4956_v43, %v4354_v47  ;;  %v4282_v57 = vld [vmem:[#allocation5 + $0x928] sm:$0xf0]  ;;  %v4221_v55 = vor.u32 %v4922_v50, %v4218_v52  ;;  %v4934_v28 = vld [vmem:[#allocation5 + $0x904] sm:$0xf]  ;;  %v4141_v32 = vor.u32 %v4902_v10, %v4138_v23  ;;  %v4642_v43 = vld [vmem:[#allocation5 + $0xbf8] sm:$0xf0] }
 0x155   :  { %2985 = vmatpush.bf16.msra.mxu0 %v4189_v38  ;;  %v2747_v39 = vadd.f32 %v2746_v21, %v2734_v35  ;;  %v2759_v51 = vpop.f32.mrf.mxu2  ;;  %v2735_v62 = vpop.f32.mrf.mxu0  ;;  %v4157_v38 = vor.u32 %v4906_v48, %v4154_v20  ;;  %v4285_v2 = vor.u32 %v4938_v54, %v4282_v57  ;;  %v4202_v14 = vld [vmem:[#allocation5 + $0x888] sm:$0xf0]  ;;  %v4950_v15 = vld [vmem:[#allocation5 + $0x984] sm:$0xf]  ;;  %v4980_v21 = vld [vmem:[#allocation5 + $0xa74] sm:$0xf] }
 0x156   :  { %2998 = vmatpush.bf16.msra.mxu1 %v4253_v63  ;;  %v2772_v59 = vpop.f32.mrf.mxu3  ;;  %v2748_v63 = vpop.f32.mrf.mxu1  ;;  %v4266_v31 = vld [vmem:[#allocation5 + $0x908] sm:$0xf0]  ;;  %v4205_v53 = vor.u32 %v4918_v30, %v4202_v14  ;;  %v4978_v48 = vld [vmem:[#allocation5 + $0xa64] sm:$0xf]  ;;  %v4976_v62 = vld [vmem:[#allocation5 + $0xa54] sm:$0xf] }
 0x157   :  { %3011 = vmatpush.bf16.msra.mxu2 %v4317_v1  ;;  %v2760_v58 = vadd.f32 %v2759_v51, %v2747_v39  ;;  %v4330_v35 = vld [vmem:[#allocation5 + $0x988] sm:$0xf0]  ;;  %v4578_v39 = vld [vmem:[#allocation5 + $0xb78] sm:$0xf0]  ;;  %v4269_v18 = vor.u32 %v4934_v28, %v4266_v31  ;;  %v4994_v50 = vld [vmem:[#allocation5 + $0xae4] sm:$0xf] }
 0x158   :  { %3024 = vmatpush.bf16.msra.mxu3 %v4381_v3  ;;  %v4146_v3 = vld [vmem:[#allocation5 + $0x818] sm:$0xf0]  ;;  %v4333_v47 = vor.u32 %v4950_v15, %v4330_v35  ;;  %v4442_v20 = vld [vmem:[#allocation5 + $0xa68] sm:$0xf0]  ;;  %v5010_v52 = vld [vmem:[#allocation5 + $0xb64] sm:$0xf] }
 0x159   :  { %2986 = vmatpush.bf16.msra.mxu0 %v4181_v6  ;;  %v5277_v1 = vadd.f32 %v2772_v59, %v2760_v58  ;;  %v4952_v6 = vld [vmem:[#allocation5 + $0x994] sm:$0xf]  ;;  %v4506_v51 = vld [vmem:[#allocation5 + $0xae8] sm:$0xf0]  ;;  %v5026_v57 = vld [vmem:[#allocation5 + $0xbe4] sm:$0xf]  ;;  %v4445_v59 = vor.u32 %v4978_v48, %v4442_v20 }
 0x15a   :  { %2999 = vmatpush.bf16.msra.mxu1 %v4245_v8  ;;  %v4338_v8 = vld [vmem:[#allocation5 + $0x998] sm:$0xf0]  ;;  %v4570_v54 = vld [vmem:[#allocation5 + $0xb68] sm:$0xf0]  ;;  %v4509_v60 = vor.u32 %v4994_v50, %v4506_v51  ;;  %v4992_v63 = vld [vmem:[#allocation5 + $0xad4] sm:$0xf] }
 0x15b   :  { %3012 = vmatpush.bf16.msra.mxu2 %v4309_v9  ;;  %v4149_v9 = vor.u32 %v4904_v41, %v4146_v3  ;;  %v4341_v33 = vor.u32 %v4952_v6, %v4338_v8  ;;  %v4634_v58 = vld [vmem:[#allocation5 + $0xbe8] sm:$0xf0]  ;;  %v4573_v61 = vor.u32 %v5010_v52, %v4570_v54  ;;  %v5008_v41 = vld [vmem:[#allocation5 + $0xb54] sm:$0xf]  ;;  %v4562_v3 = vld [vmem:[#allocation5 + $0xb58] sm:$0xf0] }
 0x15c   :  { %3025 = vmatpush.bf16.msra.mxu3 %v4373_v13  ;;  %v4277_v13 = vor.u32 %v4936_v5, %v4274_v25  ;;  %v4974_v5 = vld [vmem:[#allocation5 + $0xa44] sm:$0xf]  ;;  %v4565_v6 = vor.u32 %v5008_v41, %v4562_v3  ;;  %v4618_v30 = vld [vmem:[#allocation5 + $0xbc8] sm:$0xf0]  ;;  %v4972_v31 = vld [vmem:[#allocation5 + $0xa34] sm:$0xf] }
 0x15d   :  { %2987 = vmatpush.bf16.msra.mxu0 %v4173_v17  ;;  %v2761_v17 = vpop.f32.mrf.mxu2  ;;  %v4990_v8 = vld [vmem:[#allocation5 + $0xac4] sm:$0xf]  ;;  %v4418_v15 = vld [vmem:[#allocation5 + $0xa38] sm:$0xf0]  ;;  %v4988_v35 = vld [vmem:[#allocation5 + $0xab4] sm:$0xf] }
 0x15e   :  { %3000 = vmatpush.bf16.msra.mxu1 %v4237_v24  ;;  %v4450_v24 = vld [vmem:[#allocation5 + $0xa78] sm:$0xf0]  ;;  %v2774_v27 = vpop.f32.mrf.mxu3  ;;  %v4474_v48 = vld [vmem:[#allocation5 + $0xaa8] sm:$0xf0]  ;;  %v5002_v20 = vld [vmem:[#allocation5 + $0xb24] sm:$0xf] }
 0x15f   :  { %3013 = vmatpush.bf16.msra.mxu2 %v4301_v26  ;;  %v4996_v26 = vld [vmem:[#allocation5 + $0xaf4] sm:$0xf]  ;;  %v4538_v50 = vld [vmem:[#allocation5 + $0xb28] sm:$0xf0]  ;;  %v5018_v52 = vld [vmem:[#allocation5 + $0xba4] sm:$0xf] }
 0x160   :  { %3026 = vmatpush.bf16.msra.mxu3 %v4365_v36  ;;  %v5012_v36 = vld [vmem:[#allocation5 + $0xb74] sm:$0xf]  ;;  %v4602_v54 = vld [vmem:[#allocation5 + $0xba8] sm:$0xf0]  ;;  %v4466_v41 = vld [vmem:[#allocation5 + $0xa98] sm:$0xf0] }
 0x161   :  { %2988 = vmatpush.bf16.msra.mxu0 %v4165_v56  ;;  %v4453_v56 = vor.u32 %v4980_v21, %v4450_v24  ;;  %v5004_v27 = vld [vmem:[#allocation5 + $0xb34] sm:$0xf] }
 0x162   :  { %3001 = vmatpush.bf16.msra.mxu1 %v4229_v0  ;;  %v4517_v0 = vor.u32 %v4996_v26, %v4514_v34  ;;  %v4482_v26 = vld [vmem:[#allocation5 + $0xab8] sm:$0xf0]  ;;  %v5020_v34 = vld [vmem:[#allocation5 + $0xbb4] sm:$0xf] }
 0x163   :  { %3014 = vmatpush.bf16.msra.mxu2 %v4293_v19  ;;  %v4581_v19 = vor.u32 %v5012_v36, %v4578_v39  ;;  %v4610_v36 = vld [vmem:[#allocation5 + $0xbb8] sm:$0xf0]  ;;  %v5000_v3 = vld [vmem:[#allocation5 + $0xb14] sm:$0xf] }
 0x164   :  { %3027 = vmatpush.bf16.msra.mxu3 %v4357_v22  ;;  %v4645_v22 = vor.u32 %v5028_v40, %v4642_v43  ;;  %v4970_v43 = vld [vmem:[#allocation5 + $0xa24] sm:$0xf] }
 0x165   :  { %2989 = vmatpush.bf16.msra.mxu0 %v4157_v38  ;;  %v4434_v38 = vld [vmem:[#allocation5 + $0xa58] sm:$0xf0] }
 0x166   :  { %3002 = vmatpush.bf16.msra.mxu1 %v4221_v55  ;;  %v4637_v55 = vor.u32 %v5026_v57, %v4634_v58  ;;  %v4437_v44 = vor.u32 %v4976_v62, %v4434_v38  ;;  %v4968_v62 = vld [vmem:[#allocation5 + $0xa14] sm:$0xf]  ;;  %v4402_v38 = vld [vmem:[#allocation5 + $0xa18] sm:$0xf0] }
 0x167   :  { %3015 = vmatpush.bf16.msra.mxu2 %v4285_v2  ;;  %v4498_v2 = vld [vmem:[#allocation5 + $0xad8] sm:$0xf0] }
 0x168   :  { %3028 = vmatpush.bf16.msra.mxu3 %v4349_v4  ;;  %v4626_v4 = vld [vmem:[#allocation5 + $0xbd8] sm:$0xf0]  ;;  %v4501_v25 = vor.u32 %v4992_v63, %v4498_v2  ;;  %v4984_v63 = vld [vmem:[#allocation5 + $0xa94] sm:$0xf]  ;;  %v4605_v2 = vor.u32 %v5018_v52, %v4602_v54 }
 0x169   :  { %2990 = vmatpush.bf16.msra.mxu0 %v4149_v9  ;;  %v5036_v9 = vld [vmem:[#allocation7] sm:$0x3]  ;;  %v4629_v23 = vor.u32 %v5024_v42, %v4626_v4  ;;  %v4530_v42 = vld [vmem:[#allocation5 + $0xb18] sm:$0xf0]  ;;  %v5016_v4 = vld [vmem:[#allocation5 + $0xb94] sm:$0xf] }
 0x16a   :  { %3003 = vmatpush.bf16.msra.mxu1 %v4213_v29  ;;  %v457_v10 = vperm.slane %v5036_v9, 1  ;;  %v5006_v29 = vld [vmem:[#allocation5 + $0xb44] sm:$0xf] }
 0x16b   :  { %3016 = vmatpush.bf16.msra.mxu2 %v4277_v13  ;;  %v5022_v13 = vld [vmem:[#allocation5 + $0xbc4] sm:$0xf] }
 0x16c   :  { %3029 = vmatpush.bf16.msra.mxu3 %v4341_v33  ;;  %v4621_v24 = vor.u32 %v5022_v13, %v4618_v30  ;;  %v4982_v9 = vld [vmem:[#allocation5 + $0xa84] sm:$0xf] }
 0x16d   :  { %2991 = vmatpush.bf16.msra.mxu0 %v4141_v32  ;;  %v2785_v14 = vpop.f32.mrf.mxu0  ;;  %v4546_v32 = vld [vmem:[#allocation5 + $0xb38] sm:$0xf0]  ;;  %v5014_v30 = vld [vmem:[#allocation5 + $0xb84] sm:$0xf] }
 0x16e   :  { %3004 = vmatpush.bf16.msra.mxu1 %v4205_v53  ;;  %v2786_v17 = vadd.f32 %v2785_v14, %v457_v10  ;;  %v2798_v21 = vpop.f32.mrf.mxu1  ;;  %v4421_v53 = vor.u32 %v4972_v31, %v4418_v15  ;;  %v4549_v40 = vor.u32 %v5004_v27, %v4546_v32 }
 0x16f   :  { %3017 = vmatpush.bf16.msra.mxu2 %v4269_v18  ;;  %v4485_v18 = vor.u32 %v4988_v35, %v4482_v26 }
 0x170   :  { %3030 = vmatpush.bf16.msra.mxu3 %v4333_v47  ;;  %2992 = vmatmul.bf16.vlgmr.msra.gmra.mxu0 %v5222_v37  ;;  %v4426_v37 = vld [vmem:[#allocation5 + $0xa48] sm:$0xf0]  ;;  %v2799_v39 = vadd.f32 %v2798_v21, %v2786_v17 }
 0x171   :  { %3036 = vmatpush.bf16.msrb.mxu0 %v4453_v56  ;;  %3005 = vmatmul.bf16.vlgmr.msra.gmra.mxu1 %v5226_v46  ;;  %v4554_v46 = vld [vmem:[#allocation5 + $0xb48] sm:$0xf0]  ;;  %v4986_v56 = vld [vmem:[#allocation5 + $0xaa4] sm:$0xf] }
 0x172   :  { %3049 = vmatpush.bf16.msrb.mxu1 %v4517_v0  ;;  %3018 = vmatmul.bf16.vlgmr.msra.gmra.mxu2 %v5224_v45  ;;  %v4490_v45 = vld [vmem:[#allocation5 + $0xac8] sm:$0xf0]  ;;  %v4557_v33 = vor.u32 %v5006_v29, %v4554_v46  ;;  %v4998_v29 = vld [vmem:[#allocation5 + $0xb04] sm:$0xf] }
 0x173   :  { %3062 = vmatpush.bf16.msrb.mxu2 %v4581_v19  ;;  %3031 = vmatmul.bf16.vlgmr.msra.gmra.mxu3 %v5228_v49  ;;  %v4429_v49 = vor.u32 %v4974_v5, %v4426_v37  ;;  %v4493_v28 = vor.u32 %v4990_v8, %v4490_v45  ;;  %v4410_v47 = vld [vmem:[#allocation5 + $0xa28] sm:$0xf0]  ;;  %v4613_v19 = vor.u32 %v5020_v34, %v4610_v36  ;;  %v4966_v37 = vld [vmem:[#allocation5 + $0xa04] sm:$0xf] }
 0x174   :  { %3075 = vmatpush.bf16.msrb.mxu3 %v4645_v22  ;;  %v4413_v57 = vor.u32 %v4970_v43, %v4410_v47  ;;  %v4405_v5 = vor.u32 %v4968_v62, %v4402_v38  ;;  %v4394_v8 = vld [vmem:[#allocation5 + $0xa08] sm:$0xf0] }
 0x175   :  { %3037 = vmatpush.bf16.msrb.mxu0 %v4445_v59  ;;  %v2811_v0 = vpop.f32.mrf.mxu2  ;;  %v2787_v59 = vpop.f32.mrf.mxu0  ;;  %v4458_v45 = vld [vmem:[#allocation5 + $0xa88] sm:$0xf0]  ;;  %v4397_v14 = vor.u32 %v4966_v37, %v4394_v8 }
 0x176   :  { %3050 = vmatpush.bf16.msrb.mxu1 %v4509_v60  ;;  %v2812_v22 = vadd.f32 %v2811_v0, %v2799_v39  ;;  %v2824_v51 = vpop.f32.mrf.mxu3  ;;  %v4477_v60 = vor.u32 %v4986_v56, %v4474_v48  ;;  %v4522_v46 = vld [vmem:[#allocation5 + $0xb08] sm:$0xf0] }
 0x177   :  { %3063 = vmatpush.bf16.msrb.mxu2 %v4573_v61  ;;  %v4541_v61 = vor.u32 %v5002_v20, %v4538_v50 }
 0x178   :  { %3076 = vmatpush.bf16.msrb.mxu3 %v4637_v55  ;;  %v2825_v58 = vadd.f32 %v2824_v51, %v2812_v22  ;;  %v2800_v55 = vpop.f32.mrf.mxu1 }
 0x179   :  { %3038 = vmatpush.bf16.msrb.mxu0 %v4437_v44  ;;  %v4594_v44 = vld [vmem:[#allocation5 + $0xb98] sm:$0xf0] }
 0x17a   :  { %3051 = vmatpush.bf16.msrb.mxu1 %v4501_v25  ;;  %v4469_v25 = vor.u32 %v4984_v63, %v4466_v41 }
 0x17b   :  { %3064 = vmatpush.bf16.msrb.mxu2 %v4565_v6  ;;  %v4533_v6 = vor.u32 %v5000_v3, %v4530_v42 }
 0x17c   :  { %3077 = vmatpush.bf16.msrb.mxu3 %v4629_v23  ;;  %v4597_v23 = vor.u32 %v5016_v4, %v4594_v44 }
 0x17d   :  { %3039 = vmatpush.bf16.msrb.mxu0 %v4429_v49  ;;  %v2813_v10 = vpop.f32.mrf.mxu2  ;;  %v4586_v49 = vld [vmem:[#allocation5 + $0xb88] sm:$0xf0] }
 0x17e   :  { %3052 = vmatpush.bf16.msrb.mxu1 %v4493_v28  ;;  %v2826_v13 = vpop.f32.mrf.mxu3  ;;  %v4461_v28 = vor.u32 %v4982_v9, %v4458_v45  ;;  %v4589_v31 = vor.u32 %v5014_v30, %v4586_v49  ;;  %v3088_v49 = vmax.f32 %v5277_v1, 0.0 }
 0x17f   :  { %3065 = vmatpush.bf16.msrb.mxu2 %v4557_v33  ;;  %v4525_v33 = vor.u32 %v4998_v29, %v4522_v46 }
 0x180   :  { %3078 = vmatpush.bf16.msrb.mxu3 %v4621_v24 }
 0x181   :  { %3040 = vmatpush.bf16.msrb.mxu0 %v4421_v53 }
 0x182   :  { %3053 = vmatpush.bf16.msrb.mxu1 %v4485_v18 }
 0x183   :  { %3066 = vmatpush.bf16.msrb.mxu2 %v4549_v40 }
 0x184   :  { %3079 = vmatpush.bf16.msrb.mxu3 %v4613_v19 }
 0x185   :  { %3041 = vmatpush.bf16.msrb.mxu0 %v4413_v57 }
 0x186   :  { %3054 = vmatpush.bf16.msrb.mxu1 %v4477_v60 }
 0x187   :  { %3067 = vmatpush.bf16.msrb.mxu2 %v4541_v61 }
 0x188   :  { %3080 = vmatpush.bf16.msrb.mxu3 %v4605_v2 }
 0x189   :  { %3042 = vmatpush.bf16.msrb.mxu0 %v4405_v5 }
 0x18a   :  { %3055 = vmatpush.bf16.msrb.mxu1 %v4469_v25 }
 0x18b   :  { %3068 = vmatpush.bf16.msrb.mxu2 %v4533_v6 }
 0x18c   :  { %3081 = vmatpush.bf16.msrb.mxu3 %v4597_v23 }
 0x18d   :  { %3043 = vmatpush.bf16.msrb.mxu0 %v4397_v14  ;;  %v2837_v15 = vpop.f32.mrf.mxu0 }
 0x18e   :  { %3056 = vmatpush.bf16.msrb.mxu1 %v4461_v28  ;;  %v2838_v35 = vadd.f32 %v2837_v15, %v2825_v58  ;;  %v2850_v17 = vpop.f32.mrf.mxu1 }
 0x18f   :  { %3069 = vmatpush.bf16.msrb.mxu2 %v4525_v33 }
 0x190   :  { %3082 = vmatpush.bf16.msrb.mxu3 %v4589_v31  ;;  %3044 = vmatmul.bf16.vlgmr.msrb.gmra.mxu0 %v5236_v7  ;;  %v2851_v21 = vadd.f32 %v2850_v17, %v2838_v35 }
 0x191   :  { %3057 = vmatmul.bf16.vlgmr.msrb.gmra.mxu1 %v5240_v12 }
 0x192   :  { %3070 = vmatmul.bf16.vlgmr.msrb.gmra.mxu2 %v5238_v11 }
 0x193   :  { %3083 = vmatmul.bf16.vlgmr.msrb.gmra.mxu3 %v5242_v16 }
 0x195   :  { %v2863_v24 = vpop.f32.mrf.mxu2  ;;  %v2839_v34 = vpop.f32.mrf.mxu0 }
 0x196   :  { %v2864_v26 = vadd.f32 %v2863_v24, %v2851_v21  ;;  %v2876_v27 = vpop.f32.mrf.mxu3  ;;  %v2852_v36 = vpop.f32.mrf.mxu1 }
 0x198   :  { %v2877_v32 = vadd.f32 %v2876_v27, %v2864_v26 }
 0x19d   :  { %v2865_v39 = vpop.f32.mrf.mxu2 }
 0x19e   :  { %v2878_v53 = vpop.f32.mrf.mxu3 }
 0x1ad   :  { %v2889_v18 = vpop.f32.mrf.mxu0 }
 0x1ae   :  { %v2890_v7 = vadd.f32 %v2889_v18, %v2877_v32  ;;  %v2902_v40 = vpop.f32.mrf.mxu1 }
 0x1b0   :  { %v2903_v12 = vadd.f32 %v2902_v40, %v2890_v7 }
 0x1b5   :  { %v2915_v43 = vpop.f32.mrf.mxu2  ;;  %v2891_v16 = vpop.f32.mrf.mxu0 }
 0x1b6   :  { %v2916_v11 = vadd.f32 %v2915_v43, %v2903_v12  ;;  %v2928_v47 = vpop.f32.mrf.mxu3  ;;  %v2904_v56 = vpop.f32.mrf.mxu1 }
 0x1b8   :  { %v2929_v0 = vadd.f32 %v2928_v47, %v2916_v11 }
 0x1bd   :  { %v2917_v19 = vpop.f32.mrf.mxu2 }
 0x1be   :  { %v2930_v48 = vpop.f32.mrf.mxu3 }
 0x1cd   :  { %v2941_v20 = vpop.f32.mrf.mxu0 }
 0x1ce   :  { %v2954_v50 = vpop.f32.mrf.mxu1  ;;  %v2942_v61 = vadd.f32 %v2941_v20, %v2929_v0 }
 0x1d0   :  { %v2955_v2 = vadd.f32 %v2954_v50, %v2942_v61 }
 0x1d5   :  { %v2967_v22 = vpop.f32.mrf.mxu2  ;;  %v2943_v52 = vpop.f32.mrf.mxu0 }
 0x1d6   :  { %v2980_v51 = vpop.f32.mrf.mxu3  ;;  %v2956_v54 = vpop.f32.mrf.mxu1  ;;  %v2968_v41 = vadd.f32 %v2967_v22, %v2955_v2 }
 0x1d8   :  { %v2981_v4 = vadd.f32 %v2980_v51, %v2968_v41 }
 0x1dd   :  { %v2969_v57 = vpop.f32.mrf.mxu2 }
 0x1de   :  { %v2982_v58 = vpop.f32.mrf.mxu3 }
 0x1ed   :  { %v2993_v59 = vpop.f32.mrf.mxu0 }
 0x1ee   :  { %v3006_v60 = vpop.f32.mrf.mxu1  ;;  %v2994_v44 = vadd.f32 %v2993_v59, %v2981_v4 }
 0x1f0   :  { %v3007_v5 = vadd.f32 %v3006_v60, %v2994_v44 }
 0x1f5   :  { %v3019_v62 = vpop.f32.mrf.mxu2  ;;  %v2995_v63 = vpop.f32.mrf.mxu0 }
 0x1f6   :  { %v3032_v38 = vpop.f32.mrf.mxu3  ;;  %v3008_v55 = vpop.f32.mrf.mxu1  ;;  %v3020_v25 = vadd.f32 %v3019_v62, %v3007_v5 }
 0x1f8   :  { %v3033_v6 = vadd.f32 %v3032_v38, %v3020_v25 }
 0x1fd   :  { %v3021_v3 = vpop.f32.mrf.mxu2 }
 0x1fe   :  { %v3034_v42 = vpop.f32.mrf.mxu3 }
 0x20d   :  { %v3045_v37 = vpop.f32.mrf.mxu0 }
 0x20e   :  { %v3058_v8 = vpop.f32.mrf.mxu1  ;;  %v3046_v9 = vadd.f32 %v3045_v37, %v3033_v6 }
 0x210   :  { %v3059_v10 = vadd.f32 %v3058_v8, %v3046_v9 }
 0x215   :  { %v3071_v23 = vpop.f32.mrf.mxu2  ;;  %v3047_v46 = vpop.f32.mrf.mxu0 }
 0x216   :  { %v3072_v45 = vadd.f32 %v3071_v23, %v3059_v10  ;;  %v3084_v29 = vpop.f32.mrf.mxu3  ;;  %v3060_v13 = vpop.f32.mrf.mxu1 }
 0x218   :  { %v3085_v30 = vadd.f32 %v3084_v29, %v3072_v45 }
 0x21a   :  { %v3089_v14 = vmax.f32 %v3085_v30, 0.0 }
 0x21c   :  { %v3090_v28 = vpack.c.bf16 %v3089_v14, %v3088_v49 }
 0x21d   :  { %v3073_v33 = vpop.f32.mrf.mxu2 }
 0x21e   :  { %3091 = vst [vmem:[#allocation8] sm:$0xff] %v3090_v28  ;;  %v3086_v31 = vpop.f32.mrf.mxu3 }
 0x21f   :  { %3102 = dma.vmem_to_hbm [thread:$0]  %s3098_s2, 128, %s3100_s30, [#allocation4]  }
 0x220   :  { %5137 = dma.done.wait [#allocation4], 128  }
 0x221   :  { %5138 = vsyncadd [#allocation4], 4294967168 }
 0x222   :  { %3107 = vsyncpa [#allocation3], 1 }
 0x223   :  { %3108 = vsyncpa [#allocation6], 1 }
 0x224   :  { %3109 = vsyncpa [#allocation4], 1 }

</bundles_post_ra>
